<compile_context>
chip_gen: v7x
topology: tpu7x:2x2x1
jax: 0.10.0
libtpu: 0.0.40
codegen_flags: <defaults>
</compile_context>

<pallas_src>
import numpy as np
import jax
import jax.numpy as jnp
from jax import lax
from jax.experimental import pallas as pl
from jax.experimental.pallas import tpu as pltpu


def make_prcn_kernel(*, C, M, CM, KK, L, G, A, nOut, starts, idx_map,
                     n_partials=3):
    """Build the fused conv + shuffle/max/avg-pool kernel body."""
    inv_a = 1.0 / float(A)
    NPART = max(1, min(n_partials, KK))

    def kernel(x_ref, wm_ref, b_ref, out_ref, out_conv_ref):
        # x_ref:        (C, FLAT)      flattened input (PRE zeros in front)
        # wm_ref:       (KK*CM, L)     masked weights: row t*CM+cm = w[cm,t]*mask[t,:]
        # b_ref:        (CM, 1)        bias
        # out_ref:      (nOut, L)
        # out_conv_ref: (CM, L)

        # ---- grouped (depthwise-with-multiplier) conv, fed straight from x_ref.
        #      Per input channel ci we produce the (M, L) block of output
        #      channels [ci*M, ci*M+M); padding is pre-baked into wm.
        blocks = []
        for ci in range(C):
            row0 = ci * M
            parts = [None] * NPART                      # break the FMA chain (ILP)
            for t in range(KK):
                tap = x_ref[pl.ds(ci, 1), pl.ds(starts[t], L)]       # (1, L)
                prod = wm_ref[pl.ds(t * CM + row0, M), :] * tap      # (M, L)
                s = t % NPART
                parts[s] = prod if parts[s] is None else parts[s] + prod
            acc_ci = parts[0] + b_ref[pl.ds(row0, M), :]             # + bias (M,1)
            for p in parts[1:]:
                if p is not None:
                    acc_ci = acc_ci + p
            # store out_conv as soon as the block is ready (lane-dense store,
            # overlaps with the remaining compute); keep the value live for
            # the pooling stage -- no readback from out_conv_ref.
            out_conv_ref[pl.ds(row0, M), :] = acc_ci.astype(out_conv_ref.dtype)
            blocks.append(acc_ci)

        def chan(cm):
            """(1, L) row of conv output channel `cm`, from the live values."""
            return blocks[cm // M][(cm % M):(cm % M) + 1, :]

        # ---- repeat(1,exp,1,1)[:, index] + MaxPool3d((G,1,1)) + AvgPool3d((A,1,1)),
        #      folded into static channel indices and computed on live values.
        out_rows = []
        for k in range(nOut):
            srow = None
            for j in range(A):
                gmax = None
                for g in range(G):
                    row = chan(idx_map[(k * A + j) * G + g])
                    gmax = row if gmax is None else jnp.maximum(gmax, row)
                srow = gmax if srow is None else srow + gmax
            out_rows.append(srow * inv_a)
        out_ref[...] = jnp.concatenate(out_rows, axis=0).astype(out_ref.dtype)

    return kernel


def prcn_forward(x, W_conv, bias, index, *, nChannels, outchannels, exp, G, pad):
    """x: (B, nChannels, H, W); W_conv: (CM, 1, K, K); bias: (CM,)."""
    B, C, H, Wd = x.shape
    assert C == nChannels
    M = outchannels
    CM = C * M
    K = int(W_conv.shape[-1])
    assert W_conv.shape == (CM, 1, K, K)
    # TODO(synk): stride != 1 (non-"same" conv) is not supported by this kernel.
    assert K == 2 * pad + 1, "kernel assumes stride-1 'same' conv (K == 2*pad+1)"
    KK = K * K
    L = H * Wd
    E = exp * CM
    assert E % G == 0
    EG = E // G
    A = (C * exp) // G
    assert A >= 1 and EG % A == 0
    nOut = EG // A
    assert nOut == outchannels

    # Flattened, lightly padded input layout: [PRE zeros | x (H*W) | tail zeros].
    # No channel repeat and no spatial pad pass in HBM.
    PRE = pad * Wd + pad
    FLAT = ((L + 2 * PRE + 127) // 128) * 128
    x_buf = jnp.pad(x.reshape(B, C, L),
                    ((0, 0), (0, 0), (PRE, FLAT - L - PRE)))

    # Static per-tap lane offsets + border masks (zero padding fused into the
    # masked-weight slab below, so the in-kernel tap loop is a single FMA).
    starts = tuple(di * Wd + dj for di in range(K) for dj in range(K))
    oi = np.arange(L) // Wd
    oj = np.arange(L) % Wd
    masks_np = np.zeros((KK, L), np.float32)
    for di in range(K):
        for dj in range(K):
            ok = ((oi + di - pad >= 0) & (oi + di - pad < H) &
                  (oj + dj - pad >= 0) & (oj + dj - pad < Wd))
            masks_np[di * K + dj] = ok.astype(np.float32)
    masks = jnp.asarray(masks_np)                                   # (KK, L)

    # Lane-dense masked weights, computed once in the wrapper (constant across
    # the batch grid): wm[t*CM + cm, l] = w[cm, t] * mask[t, l].
    w2d = W_conv.reshape(CM, KK).astype(jnp.float32)                # (CM, KK)
    wm = (jnp.transpose(w2d)[:, :, None] * masks[:, None, :]).reshape(KK * CM, L)
    b2d = bias.reshape(CM, 1).astype(jnp.float32)

    # repeat(1, exp, 1, 1)[:, index] folded into a static channel map.
    idx_map = tuple(int(i) % CM for i in np.asarray(index))

    kernel = make_prcn_kernel(
        C=C, M=M, CM=CM, KK=KK, L=L, G=G, A=A, nOut=nOut,
        starts=starts, idx_map=idx_map)

    out_flat, out_conv_flat = pl.pallas_call(
        kernel,
        out_shape=(
            jax.ShapeDtypeStruct((B, nOut, L), x.dtype),
            jax.ShapeDtypeStruct((B, CM, L), x.dtype),
        ),
        grid=(B,),
        in_specs=[
            pl.BlockSpec((None, C, FLAT), lambda b: (b, 0, 0)),   # input slab
            pl.BlockSpec((KK * CM, L), lambda b: (0, 0)),         # masked weights
            pl.BlockSpec((CM, 1), lambda b: (0, 0)),              # bias
        ],
        out_specs=(
            pl.BlockSpec((None, nOut, L), lambda b: (b, 0, 0)),
            pl.BlockSpec((None, CM, L), lambda b: (b, 0, 0)),
        ),
        compiler_params=pltpu.CompilerParams(
            dimension_semantics=("parallel",)),
    )(x_buf, wm, b2d)

    # Free layout plumbing: lane-dense H*W back to (H, W).
    out = out_flat.reshape(B, nOut, H, Wd)
    out_conv = out_conv_flat.reshape(B, CM, H, Wd)
    return out, out_conv


def reference(x, W_conv, bias, index, *, nChannels, outchannels, exp, G, pad):
    """Pure-JAX reference matching the PyTorch module (exact f32 conv)."""
    conv = lax.conv_general_dilated(
        x, W_conv, window_strides=(1, 1), padding=[(pad, pad), (pad, pad)],
        dimension_numbers=("NCHW", "OIHW", "NCHW"),
        feature_group_count=nChannels,
        precision=lax.Precision.HIGHEST)
    conv = conv + bias[None, :, None, None]
    B, CM, H, Wd = conv.shape
    rep = jnp.tile(conv, (1, exp, 1, 1))                 # == torch .repeat(1, exp, 1, 1)
    perm = rep[:, np.asarray(index)]
    A = int(nChannels * exp // G)
    mx = perm.reshape(B, -1, G, H, Wd).max(axis=2)       # MaxPool3d((G,1,1))
    out = mx.reshape(B, outchannels, A, H, Wd).mean(axis=2)  # AvgPool3d((A,1,1))
    return out, conv


if __name__ == "__main__":
    # Small config consistent with the module's constraints
    # (G divides exp*CM, avgpool_size = nChannels*exp/G divides exp*CM/G).
    nChannels, outchannels, exp, G = 4, 4, 2, 2
    K, pad = 3, 1
    B, H, W = 2, 16, 16
    CM = nChannels * outchannels
    expansion = outchannels * nChannels * exp

    key = jax.random.PRNGKey(0)
    kx, kw, kb = jax.random.split(key, 3)
    x = jax.random.normal(kx, (B, nChannels, H, W), dtype=jnp.float32)
    W_conv = 0.1 * jax.random.normal(kw, (CM, 1, K, K), dtype=jnp.float32)
    bias = 0.1 * jax.random.normal(kb, (CM,), dtype=jnp.float32)
    # Deterministic stand-in for the module's random.shuffle(range(expansion)).
    index = np.random.RandomState(0).permutation(expansion)

    out, out_conv = prcn_forward(
        x, W_conv, bias, index,
        nChannels=nChannels, outchannels=outchannels, exp=exp, G=G, pad=pad)
    jax.block_until_ready((out, out_conv))

    ref_out, ref_conv = reference(
        x, W_conv, bias, index,
        nChannels=nChannels, outchannels=outchannels, exp=exp, G=G, pad=pad)
    np.testing.assert_allclose(np.asarray(out_conv), np.asarray(ref_conv),
                               rtol=1e-5, atol=1e-5)
    np.testing.assert_allclose(np.asarray(out), np.asarray(ref_out),
                               rtol=1e-5, atol=1e-5)
    print("KERNEL_OK")
</pallas_src>

<mosaic_0001>
module attributes {stable_mosaic.version = 11 : i64} {
  func.func @kernel(%arg0: i32, %arg1: memref<1x4x384xf32, #tpu.memory_space<vmem>>, %arg2: memref<144x256xf32, #tpu.memory_space<vmem>>, %arg3: memref<16x1xf32, #tpu.memory_space<vmem>>, %arg4: memref<1x4x256xf32, #tpu.memory_space<vmem>>, %arg5: memref<1x16x256xf32, #tpu.memory_space<vmem>>) attributes {dimension_semantics = [#tpu.dimension_semantics<parallel>], iteration_bounds = array<i64: 2>, scalar_prefetch = 0 : i64, scratch_operands = 0 : i64, tpu.core_type = #tpu.core_type<tc>, window_params = [{transform_indices = @transform_0, window_bounds = array<i64: 1, 4, 384>}, {pipeline_mode = #tpu.pipeline_mode<synchronous>, transform_indices = @transform_1, window_bounds = array<i64: 144, 256>}, {pipeline_mode = #tpu.pipeline_mode<synchronous>, transform_indices = @transform_2, window_bounds = array<i64: 16, 1>}, {transform_indices = @transform_3, window_bounds = array<i64: 1, 4, 256>}, {transform_indices = @transform_4, window_bounds = array<i64: 1, 16, 256>}]} {
    %c0 = arith.constant 0 : index
    %c0_0 = arith.constant 0 : index
    %c0_1 = arith.constant 0 : index
    %0 = vector.load %arg1[%c0, %c0_0, %c0_1] : memref<1x4x384xf32, #tpu.memory_space<vmem>>, vector<1x1x256xf32>
    %1 = vector.shape_cast %0 : vector<1x1x256xf32> to vector<1x256xf32>
    %c0_2 = arith.constant 0 : index
    %c0_3 = arith.constant 0 : index
    %2 = vector.load %arg2[%c0_2, %c0_3] : memref<144x256xf32, #tpu.memory_space<vmem>>, vector<4x256xf32>
    %3 = vector.broadcast %1 : vector<1x256xf32> to vector<4x256xf32>
    %4 = arith.mulf %2, %3 : vector<4x256xf32>
    %c0_4 = arith.constant 0 : index
    %c0_5 = arith.constant 0 : index
    %c1 = arith.constant 1 : index
    %5 = vector.load %arg1[%c0_4, %c0_5, %c1] : memref<1x4x384xf32, #tpu.memory_space<vmem>>, vector<1x1x256xf32>
    %6 = vector.shape_cast %5 : vector<1x1x256xf32> to vector<1x256xf32>
    %c16 = arith.constant 16 : index
    %c0_6 = arith.constant 0 : index
    %7 = vector.load %arg2[%c16, %c0_6] : memref<144x256xf32, #tpu.memory_space<vmem>>, vector<4x256xf32>
    %8 = vector.broadcast %6 : vector<1x256xf32> to vector<4x256xf32>
    %9 = arith.mulf %7, %8 : vector<4x256xf32>
    %c0_7 = arith.constant 0 : index
    %c0_8 = arith.constant 0 : index
    %c2 = arith.constant 2 : index
    %10 = vector.load %arg1[%c0_7, %c0_8, %c2] : memref<1x4x384xf32, #tpu.memory_space<vmem>>, vector<1x1x256xf32>
    %11 = vector.shape_cast %10 : vector<1x1x256xf32> to vector<1x256xf32>
    %c32 = arith.constant 32 : index
    %c0_9 = arith.constant 0 : index
    %12 = vector.load %arg2[%c32, %c0_9] : memref<144x256xf32, #tpu.memory_space<vmem>>, vector<4x256xf32>
    %13 = vector.broadcast %11 : vector<1x256xf32> to vector<4x256xf32>
    %14 = arith.mulf %12, %13 : vector<4x256xf32>
    %c0_10 = arith.constant 0 : index
    %c0_11 = arith.constant 0 : index
    %c16_12 = arith.constant 16 : index
    %15 = vector.load %arg1[%c0_10, %c0_11, %c16_12] : memref<1x4x384xf32, #tpu.memory_space<vmem>>, vector<1x1x256xf32>
    %16 = vector.shape_cast %15 : vector<1x1x256xf32> to vector<1x256xf32>
    %c48 = arith.constant 48 : index
    %c0_13 = arith.constant 0 : index
    %17 = vector.load %arg2[%c48, %c0_13] : memref<144x256xf32, #tpu.memory_space<vmem>>, vector<4x256xf32>
    %18 = vector.broadcast %16 : vector<1x256xf32> to vector<4x256xf32>
    %19 = arith.mulf %17, %18 : vector<4x256xf32>
    %20 = arith.addf %4, %19 : vector<4x256xf32>
    %c0_14 = arith.constant 0 : index
    %c0_15 = arith.constant 0 : index
    %c17 = arith.constant 17 : index
    %21 = vector.load %arg1[%c0_14, %c0_15, %c17] : memref<1x4x384xf32, #tpu.memory_space<vmem>>, vector<1x1x256xf32>
    %22 = vector.shape_cast %21 : vector<1x1x256xf32> to vector<1x256xf32>
    %c64 = arith.constant 64 : index
    %c0_16 = arith.constant 0 : index
    %23 = vector.load %arg2[%c64, %c0_16] : memref<144x256xf32, #tpu.memory_space<vmem>>, vector<4x256xf32>
    %24 = vector.broadcast %22 : vector<1x256xf32> to vector<4x256xf32>
    %25 = arith.mulf %23, %24 : vector<4x256xf32>
    %26 = arith.addf %9, %25 : vector<4x256xf32>
    %c0_17 = arith.constant 0 : index
    %c0_18 = arith.constant 0 : index
    %c18 = arith.constant 18 : index
    %27 = vector.load %arg1[%c0_17, %c0_18, %c18] : memref<1x4x384xf32, #tpu.memory_space<vmem>>, vector<1x1x256xf32>
    %28 = vector.shape_cast %27 : vector<1x1x256xf32> to vector<1x256xf32>
    %c80 = arith.constant 80 : index
    %c0_19 = arith.constant 0 : index
    %29 = vector.load %arg2[%c80, %c0_19] : memref<144x256xf32, #tpu.memory_space<vmem>>, vector<4x256xf32>
    %30 = vector.broadcast %28 : vector<1x256xf32> to vector<4x256xf32>
    %31 = arith.mulf %29, %30 : vector<4x256xf32>
    %32 = arith.addf %14, %31 : vector<4x256xf32>
    %c0_20 = arith.constant 0 : index
    %c0_21 = arith.constant 0 : index
    %c32_22 = arith.constant 32 : index
    %33 = vector.load %arg1[%c0_20, %c0_21, %c32_22] : memref<1x4x384xf32, #tpu.memory_space<vmem>>, vector<1x1x256xf32>
    %34 = vector.shape_cast %33 : vector<1x1x256xf32> to vector<1x256xf32>
    %c96 = arith.constant 96 : index
    %c0_23 = arith.constant 0 : index
    %35 = vector.load %arg2[%c96, %c0_23] : memref<144x256xf32, #tpu.memory_space<vmem>>, vector<4x256xf32>
    %36 = vector.broadcast %34 : vector<1x256xf32> to vector<4x256xf32>
    %37 = arith.mulf %35, %36 : vector<4x256xf32>
    %38 = arith.addf %20, %37 : vector<4x256xf32>
    %c0_24 = arith.constant 0 : index
    %c0_25 = arith.constant 0 : index
    %c33 = arith.constant 33 : index
    %39 = vector.load %arg1[%c0_24, %c0_25, %c33] : memref<1x4x384xf32, #tpu.memory_space<vmem>>, vector<1x1x256xf32>
    %40 = vector.shape_cast %39 : vector<1x1x256xf32> to vector<1x256xf32>
    %c112 = arith.constant 112 : index
    %c0_26 = arith.constant 0 : index
    %41 = vector.load %arg2[%c112, %c0_26] : memref<144x256xf32, #tpu.memory_space<vmem>>, vector<4x256xf32>
    %42 = vector.broadcast %40 : vector<1x256xf32> to vector<4x256xf32>
    %43 = arith.mulf %41, %42 : vector<4x256xf32>
    %44 = arith.addf %26, %43 : vector<4x256xf32>
    %c0_27 = arith.constant 0 : index
    %c0_28 = arith.constant 0 : index
    %c34 = arith.constant 34 : index
    %45 = vector.load %arg1[%c0_27, %c0_28, %c34] : memref<1x4x384xf32, #tpu.memory_space<vmem>>, vector<1x1x256xf32>
    %46 = vector.shape_cast %45 : vector<1x1x256xf32> to vector<1x256xf32>
    %c128 = arith.constant 128 : index
    %c0_29 = arith.constant 0 : index
    %47 = vector.load %arg2[%c128, %c0_29] : memref<144x256xf32, #tpu.memory_space<vmem>>, vector<4x256xf32>
    %48 = vector.broadcast %46 : vector<1x256xf32> to vector<4x256xf32>
    %49 = arith.mulf %47, %48 : vector<4x256xf32>
    %50 = arith.addf %32, %49 : vector<4x256xf32>
    %c0_30 = arith.constant 0 : index
    %c0_31 = arith.constant 0 : index
    %51 = vector.load %arg3[%c0_30, %c0_31] : memref<16x1xf32, #tpu.memory_space<vmem>>, vector<4x1xf32>
    %52 = vector.broadcast %51 : vector<4x1xf32> to vector<4x256xf32>
    %53 = arith.addf %38, %52 : vector<4x256xf32>
    %54 = arith.addf %53, %44 : vector<4x256xf32>
    %55 = arith.addf %54, %50 : vector<4x256xf32>
    %c0_32 = arith.constant 0 : index
    %c0_33 = arith.constant 0 : index
    %c0_34 = arith.constant 0 : index
    %56 = vector.load %arg5[%c0_32, %c0_33, %c0_34] : memref<1x16x256xf32, #tpu.memory_space<vmem>>, vector<1x4x256xf32>
    %57 = vector.shape_cast %56 : vector<1x4x256xf32> to vector<4x256xf32>
    %58 = vector.shape_cast %55 : vector<4x256xf32> to vector<1x4x256xf32>
    tpu.vector_store %arg5[%c0_32, %c0_33, %c0_34], %58 {strides = array<i32>} : memref<1x16x256xf32, #tpu.memory_space<vmem>>, vector<1x4x256xf32>,
    %c0_35 = arith.constant 0 : index
    %c1_36 = arith.constant 1 : index
    %c0_37 = arith.constant 0 : index
    %59 = vector.load %arg1[%c0_35, %c1_36, %c0_37] : memref<1x4x384xf32, #tpu.memory_space<vmem>>, vector<1x1x256xf32>
    %60 = vector.shape_cast %59 : vector<1x1x256xf32> to vector<1x256xf32>
    %c4 = arith.constant 4 : index
    %c0_38 = arith.constant 0 : index
    %61 = vector.load %arg2[%c4, %c0_38] : memref<144x256xf32, #tpu.memory_space<vmem>>, vector<4x256xf32>
    %62 = vector.broadcast %60 : vector<1x256xf32> to vector<4x256xf32>
    %63 = arith.mulf %61, %62 : vector<4x256xf32>
    %c0_39 = arith.constant 0 : index
    %c1_40 = arith.constant 1 : index
    %c1_41 = arith.constant 1 : index
    %64 = vector.load %arg1[%c0_39, %c1_40, %c1_41] : memref<1x4x384xf32, #tpu.memory_space<vmem>>, vector<1x1x256xf32>
    %65 = vector.shape_cast %64 : vector<1x1x256xf32> to vector<1x256xf32>
    %c20 = arith.constant 20 : index
    %c0_42 = arith.constant 0 : index
    %66 = vector.load %arg2[%c20, %c0_42] : memref<144x256xf32, #tpu.memory_space<vmem>>, vector<4x256xf32>
    %67 = vector.broadcast %65 : vector<1x256xf32> to vector<4x256xf32>
    %68 = arith.mulf %66, %67 : vector<4x256xf32>
    %c0_43 = arith.constant 0 : index
    %c1_44 = arith.constant 1 : index
    %c2_45 = arith.constant 2 : index
    %69 = vector.load %arg1[%c0_43, %c1_44, %c2_45] : memref<1x4x384xf32, #tpu.memory_space<vmem>>, vector<1x1x256xf32>
    %70 = vector.shape_cast %69 : vector<1x1x256xf32> to vector<1x256xf32>
    %c36 = arith.constant 36 : index
    %c0_46 = arith.constant 0 : index
    %71 = vector.load %arg2[%c36, %c0_46] : memref<144x256xf32, #tpu.memory_space<vmem>>, vector<4x256xf32>
    %72 = vector.broadcast %70 : vector<1x256xf32> to vector<4x256xf32>
    %73 = arith.mulf %71, %72 : vector<4x256xf32>
    %c0_47 = arith.constant 0 : index
    %c1_48 = arith.constant 1 : index
    %c16_49 = arith.constant 16 : index
    %74 = vector.load %arg1[%c0_47, %c1_48, %c16_49] : memref<1x4x384xf32, #tpu.memory_space<vmem>>, vector<1x1x256xf32>
    %75 = vector.shape_cast %74 : vector<1x1x256xf32> to vector<1x256xf32>
    %c52 = arith.constant 52 : index
    %c0_50 = arith.constant 0 : index
    %76 = vector.load %arg2[%c52, %c0_50] : memref<144x256xf32, #tpu.memory_space<vmem>>, vector<4x256xf32>
    %77 = vector.broadcast %75 : vector<1x256xf32> to vector<4x256xf32>
    %78 = arith.mulf %76, %77 : vector<4x256xf32>
    %79 = arith.addf %63, %78 : vector<4x256xf32>
    %c0_51 = arith.constant 0 : index
    %c1_52 = arith.constant 1 : index
    %c17_53 = arith.constant 17 : index
    %80 = vector.load %arg1[%c0_51, %c1_52, %c17_53] : memref<1x4x384xf32, #tpu.memory_space<vmem>>, vector<1x1x256xf32>
    %81 = vector.shape_cast %80 : vector<1x1x256xf32> to vector<1x256xf32>
    %c68 = arith.constant 68 : index
    %c0_54 = arith.constant 0 : index
    %82 = vector.load %arg2[%c68, %c0_54] : memref<144x256xf32, #tpu.memory_space<vmem>>, vector<4x256xf32>
    %83 = vector.broadcast %81 : vector<1x256xf32> to vector<4x256xf32>
    %84 = arith.mulf %82, %83 : vector<4x256xf32>
    %85 = arith.addf %68, %84 : vector<4x256xf32>
    %c0_55 = arith.constant 0 : index
    %c1_56 = arith.constant 1 : index
    %c18_57 = arith.constant 18 : index
    %86 = vector.load %arg1[%c0_55, %c1_56, %c18_57] : memref<1x4x384xf32, #tpu.memory_space<vmem>>, vector<1x1x256xf32>
    %87 = vector.shape_cast %86 : vector<1x1x256xf32> to vector<1x256xf32>
    %c84 = arith.constant 84 : index
    %c0_58 = arith.constant 0 : index
    %88 = vector.load %arg2[%c84, %c0_58] : memref<144x256xf32, #tpu.memory_space<vmem>>, vector<4x256xf32>
    %89 = vector.broadcast %87 : vector<1x256xf32> to vector<4x256xf32>
    %90 = arith.mulf %88, %89 : vector<4x256xf32>
    %91 = arith.addf %73, %90 : vector<4x256xf32>
    %c0_59 = arith.constant 0 : index
    %c1_60 = arith.constant 1 : index
    %c32_61 = arith.constant 32 : index
    %92 = vector.load %arg1[%c0_59, %c1_60, %c32_61] : memref<1x4x384xf32, #tpu.memory_space<vmem>>, vector<1x1x256xf32>
    %93 = vector.shape_cast %92 : vector<1x1x256xf32> to vector<1x256xf32>
    %c100 = arith.constant 100 : index
    %c0_62 = arith.constant 0 : index
    %94 = vector.load %arg2[%c100, %c0_62] : memref<144x256xf32, #tpu.memory_space<vmem>>, vector<4x256xf32>
    %95 = vector.broadcast %93 : vector<1x256xf32> to vector<4x256xf32>
    %96 = arith.mulf %94, %95 : vector<4x256xf32>
    %97 = arith.addf %79, %96 : vector<4x256xf32>
    %c0_63 = arith.constant 0 : index
    %c1_64 = arith.constant 1 : index
    %c33_65 = arith.constant 33 : index
    %98 = vector.load %arg1[%c0_63, %c1_64, %c33_65] : memref<1x4x384xf32, #tpu.memory_space<vmem>>, vector<1x1x256xf32>
    %99 = vector.shape_cast %98 : vector<1x1x256xf32> to vector<1x256xf32>
    %c116 = arith.constant 116 : index
    %c0_66 = arith.constant 0 : index
    %100 = vector.load %arg2[%c116, %c0_66] : memref<144x256xf32, #tpu.memory_space<vmem>>, vector<4x256xf32>
    %101 = vector.broadcast %99 : vector<1x256xf32> to vector<4x256xf32>
    %102 = arith.mulf %100, %101 : vector<4x256xf32>
    %103 = arith.addf %85, %102 : vector<4x256xf32>
    %c0_67 = arith.constant 0 : index
    %c1_68 = arith.constant 1 : index
    %c34_69 = arith.constant 34 : index
    %104 = vector.load %arg1[%c0_67, %c1_68, %c34_69] : memref<1x4x384xf32, #tpu.memory_space<vmem>>, vector<1x1x256xf32>
    %105 = vector.shape_cast %104 : vector<1x1x256xf32> to vector<1x256xf32>
    %c132 = arith.constant 132 : index
    %c0_70 = arith.constant 0 : index
    %106 = vector.load %arg2[%c132, %c0_70] : memref<144x256xf32, #tpu.memory_space<vmem>>, vector<4x256xf32>
    %107 = vector.broadcast %105 : vector<1x256xf32> to vector<4x256xf32>
    %108 = arith.mulf %106, %107 : vector<4x256xf32>
    %109 = arith.addf %91, %108 : vector<4x256xf32>
    %c4_71 = arith.constant 4 : index
    %c0_72 = arith.constant 0 : index
    %110 = vector.load %arg3[%c4_71, %c0_72] : memref<16x1xf32, #tpu.memory_space<vmem>>, vector<4x1xf32>
    %111 = vector.broadcast %110 : vector<4x1xf32> to vector<4x256xf32>
    %112 = arith.addf %97, %111 : vector<4x256xf32>
    %113 = arith.addf %112, %103 : vector<4x256xf32>
    %114 = arith.addf %113, %109 : vector<4x256xf32>
    %c0_73 = arith.constant 0 : index
    %c4_74 = arith.constant 4 : index
    %c0_75 = arith.constant 0 : index
    %115 = vector.load %arg5[%c0_73, %c4_74, %c0_75] : memref<1x16x256xf32, #tpu.memory_space<vmem>>, vector<1x4x256xf32>
    %116 = vector.shape_cast %115 : vector<1x4x256xf32> to vector<4x256xf32>
    %117 = vector.shape_cast %114 : vector<4x256xf32> to vector<1x4x256xf32>
    tpu.vector_store %arg5[%c0_73, %c4_74, %c0_75], %117 {strides = array<i32>} : memref<1x16x256xf32, #tpu.memory_space<vmem>>, vector<1x4x256xf32>,
    %c0_76 = arith.constant 0 : index
    %c2_77 = arith.constant 2 : index
    %c0_78 = arith.constant 0 : index
    %118 = vector.load %arg1[%c0_76, %c2_77, %c0_78] : memref<1x4x384xf32, #tpu.memory_space<vmem>>, vector<1x1x256xf32>
    %119 = vector.shape_cast %118 : vector<1x1x256xf32> to vector<1x256xf32>
    %c8 = arith.constant 8 : index
    %c0_79 = arith.constant 0 : index
    %120 = vector.load %arg2[%c8, %c0_79] : memref<144x256xf32, #tpu.memory_space<vmem>>, vector<4x256xf32>
    %121 = vector.broadcast %119 : vector<1x256xf32> to vector<4x256xf32>
    %122 = arith.mulf %120, %121 : vector<4x256xf32>
    %c0_80 = arith.constant 0 : index
    %c2_81 = arith.constant 2 : index
    %c1_82 = arith.constant 1 : index
    %123 = vector.load %arg1[%c0_80, %c2_81, %c1_82] : memref<1x4x384xf32, #tpu.memory_space<vmem>>, vector<1x1x256xf32>
    %124 = vector.shape_cast %123 : vector<1x1x256xf32> to vector<1x256xf32>
    %c24 = arith.constant 24 : index
    %c0_83 = arith.constant 0 : index
    %125 = vector.load %arg2[%c24, %c0_83] : memref<144x256xf32, #tpu.memory_space<vmem>>, vector<4x256xf32>
    %126 = vector.broadcast %124 : vector<1x256xf32> to vector<4x256xf32>
    %127 = arith.mulf %125, %126 : vector<4x256xf32>
    %c0_84 = arith.constant 0 : index
    %c2_85 = arith.constant 2 : index
    %c2_86 = arith.constant 2 : index
    %128 = vector.load %arg1[%c0_84, %c2_85, %c2_86] : memref<1x4x384xf32, #tpu.memory_space<vmem>>, vector<1x1x256xf32>
    %129 = vector.shape_cast %128 : vector<1x1x256xf32> to vector<1x256xf32>
    %c40 = arith.constant 40 : index
    %c0_87 = arith.constant 0 : index
    %130 = vector.load %arg2[%c40, %c0_87] : memref<144x256xf32, #tpu.memory_space<vmem>>, vector<4x256xf32>
    %131 = vector.broadcast %129 : vector<1x256xf32> to vector<4x256xf32>
    %132 = arith.mulf %130, %131 : vector<4x256xf32>
    %c0_88 = arith.constant 0 : index
    %c2_89 = arith.constant 2 : index
    %c16_90 = arith.constant 16 : index
    %133 = vector.load %arg1[%c0_88, %c2_89, %c16_90] : memref<1x4x384xf32, #tpu.memory_space<vmem>>, vector<1x1x256xf32>
    %134 = vector.shape_cast %133 : vector<1x1x256xf32> to vector<1x256xf32>
    %c56 = arith.constant 56 : index
    %c0_91 = arith.constant 0 : index
    %135 = vector.load %arg2[%c56, %c0_91] : memref<144x256xf32, #tpu.memory_space<vmem>>, vector<4x256xf32>
    %136 = vector.broadcast %134 : vector<1x256xf32> to vector<4x256xf32>
    %137 = arith.mulf %135, %136 : vector<4x256xf32>
    %138 = arith.addf %122, %137 : vector<4x256xf32>
    %c0_92 = arith.constant 0 : index
    %c2_93 = arith.constant 2 : index
    %c17_94 = arith.constant 17 : index
    %139 = vector.load %arg1[%c0_92, %c2_93, %c17_94] : memref<1x4x384xf32, #tpu.memory_space<vmem>>, vector<1x1x256xf32>
    %140 = vector.shape_cast %139 : vector<1x1x256xf32> to vector<1x256xf32>
    %c72 = arith.constant 72 : index
    %c0_95 = arith.constant 0 : index
    %141 = vector.load %arg2[%c72, %c0_95] : memref<144x256xf32, #tpu.memory_space<vmem>>, vector<4x256xf32>
    %142 = vector.broadcast %140 : vector<1x256xf32> to vector<4x256xf32>
    %143 = arith.mulf %141, %142 : vector<4x256xf32>
    %144 = arith.addf %127, %143 : vector<4x256xf32>
    %c0_96 = arith.constant 0 : index
    %c2_97 = arith.constant 2 : index
    %c18_98 = arith.constant 18 : index
    %145 = vector.load %arg1[%c0_96, %c2_97, %c18_98] : memref<1x4x384xf32, #tpu.memory_space<vmem>>, vector<1x1x256xf32>
    %146 = vector.shape_cast %145 : vector<1x1x256xf32> to vector<1x256xf32>
    %c88 = arith.constant 88 : index
    %c0_99 = arith.constant 0 : index
    %147 = vector.load %arg2[%c88, %c0_99] : memref<144x256xf32, #tpu.memory_space<vmem>>, vector<4x256xf32>
    %148 = vector.broadcast %146 : vector<1x256xf32> to vector<4x256xf32>
    %149 = arith.mulf %147, %148 : vector<4x256xf32>
    %150 = arith.addf %132, %149 : vector<4x256xf32>
    %c0_100 = arith.constant 0 : index
    %c2_101 = arith.constant 2 : index
    %c32_102 = arith.constant 32 : index
    %151 = vector.load %arg1[%c0_100, %c2_101, %c32_102] : memref<1x4x384xf32, #tpu.memory_space<vmem>>, vector<1x1x256xf32>
    %152 = vector.shape_cast %151 : vector<1x1x256xf32> to vector<1x256xf32>
    %c104 = arith.constant 104 : index
    %c0_103 = arith.constant 0 : index
    %153 = vector.load %arg2[%c104, %c0_103] : memref<144x256xf32, #tpu.memory_space<vmem>>, vector<4x256xf32>
    %154 = vector.broadcast %152 : vector<1x256xf32> to vector<4x256xf32>
    %155 = arith.mulf %153, %154 : vector<4x256xf32>
    %156 = arith.addf %138, %155 : vector<4x256xf32>
    %c0_104 = arith.constant 0 : index
    %c2_105 = arith.constant 2 : index
    %c33_106 = arith.constant 33 : index
    %157 = vector.load %arg1[%c0_104, %c2_105, %c33_106] : memref<1x4x384xf32, #tpu.memory_space<vmem>>, vector<1x1x256xf32>
    %158 = vector.shape_cast %157 : vector<1x1x256xf32> to vector<1x256xf32>
    %c120 = arith.constant 120 : index
    %c0_107 = arith.constant 0 : index
    %159 = vector.load %arg2[%c120, %c0_107] : memref<144x256xf32, #tpu.memory_space<vmem>>, vector<4x256xf32>
    %160 = vector.broadcast %158 : vector<1x256xf32> to vector<4x256xf32>
    %161 = arith.mulf %159, %160 : vector<4x256xf32>
    %162 = arith.addf %144, %161 : vector<4x256xf32>
    %c0_108 = arith.constant 0 : index
    %c2_109 = arith.constant 2 : index
    %c34_110 = arith.constant 34 : index
    %163 = vector.load %arg1[%c0_108, %c2_109, %c34_110] : memref<1x4x384xf32, #tpu.memory_space<vmem>>, vector<1x1x256xf32>
    %164 = vector.shape_cast %163 : vector<1x1x256xf32> to vector<1x256xf32>
    %c136 = arith.constant 136 : index
    %c0_111 = arith.constant 0 : index
    %165 = vector.load %arg2[%c136, %c0_111] : memref<144x256xf32, #tpu.memory_space<vmem>>, vector<4x256xf32>
    %166 = vector.broadcast %164 : vector<1x256xf32> to vector<4x256xf32>
    %167 = arith.mulf %165, %166 : vector<4x256xf32>
    %168 = arith.addf %150, %167 : vector<4x256xf32>
    %c8_112 = arith.constant 8 : index
    %c0_113 = arith.constant 0 : index
    %169 = vector.load %arg3[%c8_112, %c0_113] : memref<16x1xf32, #tpu.memory_space<vmem>>, vector<4x1xf32>
    %170 = vector.broadcast %169 : vector<4x1xf32> to vector<4x256xf32>
    %171 = arith.addf %156, %170 : vector<4x256xf32>
    %172 = arith.addf %171, %162 : vector<4x256xf32>
    %173 = arith.addf %172, %168 : vector<4x256xf32>
    %c0_114 = arith.constant 0 : index
    %c8_115 = arith.constant 8 : index
    %c0_116 = arith.constant 0 : index
    %174 = vector.load %arg5[%c0_114, %c8_115, %c0_116] : memref<1x16x256xf32, #tpu.memory_space<vmem>>, vector<1x4x256xf32>
    %175 = vector.shape_cast %174 : vector<1x4x256xf32> to vector<4x256xf32>
    %176 = vector.shape_cast %173 : vector<4x256xf32> to vector<1x4x256xf32>
    tpu.vector_store %arg5[%c0_114, %c8_115, %c0_116], %176 {strides = array<i32>} : memref<1x16x256xf32, #tpu.memory_space<vmem>>, vector<1x4x256xf32>,
    %c0_117 = arith.constant 0 : index
    %c3 = arith.constant 3 : index
    %c0_118 = arith.constant 0 : index
    %177 = vector.load %arg1[%c0_117, %c3, %c0_118] : memref<1x4x384xf32, #tpu.memory_space<vmem>>, vector<1x1x256xf32>
    %178 = vector.shape_cast %177 : vector<1x1x256xf32> to vector<1x256xf32>
    %c12 = arith.constant 12 : index
    %c0_119 = arith.constant 0 : index
    %179 = vector.load %arg2[%c12, %c0_119] : memref<144x256xf32, #tpu.memory_space<vmem>>, vector<4x256xf32>
    %180 = vector.broadcast %178 : vector<1x256xf32> to vector<4x256xf32>
    %181 = arith.mulf %179, %180 : vector<4x256xf32>
    %c0_120 = arith.constant 0 : index
    %c3_121 = arith.constant 3 : index
    %c1_122 = arith.constant 1 : index
    %182 = vector.load %arg1[%c0_120, %c3_121, %c1_122] : memref<1x4x384xf32, #tpu.memory_space<vmem>>, vector<1x1x256xf32>
    %183 = vector.shape_cast %182 : vector<1x1x256xf32> to vector<1x256xf32>
    %c28 = arith.constant 28 : index
    %c0_123 = arith.constant 0 : index
    %184 = vector.load %arg2[%c28, %c0_123] : memref<144x256xf32, #tpu.memory_space<vmem>>, vector<4x256xf32>
    %185 = vector.broadcast %183 : vector<1x256xf32> to vector<4x256xf32>
    %186 = arith.mulf %184, %185 : vector<4x256xf32>
    %c0_124 = arith.constant 0 : index
    %c3_125 = arith.constant 3 : index
    %c2_126 = arith.constant 2 : index
    %187 = vector.load %arg1[%c0_124, %c3_125, %c2_126] : memref<1x4x384xf32, #tpu.memory_space<vmem>>, vector<1x1x256xf32>
    %188 = vector.shape_cast %187 : vector<1x1x256xf32> to vector<1x256xf32>
    %c44 = arith.constant 44 : index
    %c0_127 = arith.constant 0 : index
    %189 = vector.load %arg2[%c44, %c0_127] : memref<144x256xf32, #tpu.memory_space<vmem>>, vector<4x256xf32>
    %190 = vector.broadcast %188 : vector<1x256xf32> to vector<4x256xf32>
    %191 = arith.mulf %189, %190 : vector<4x256xf32>
    %c0_128 = arith.constant 0 : index
    %c3_129 = arith.constant 3 : index
    %c16_130 = arith.constant 16 : index
    %192 = vector.load %arg1[%c0_128, %c3_129, %c16_130] : memref<1x4x384xf32, #tpu.memory_space<vmem>>, vector<1x1x256xf32>
    %193 = vector.shape_cast %192 : vector<1x1x256xf32> to vector<1x256xf32>
    %c60 = arith.constant 60 : index
    %c0_131 = arith.constant 0 : index
    %194 = vector.load %arg2[%c60, %c0_131] : memref<144x256xf32, #tpu.memory_space<vmem>>, vector<4x256xf32>
    %195 = vector.broadcast %193 : vector<1x256xf32> to vector<4x256xf32>
    %196 = arith.mulf %194, %195 : vector<4x256xf32>
    %197 = arith.addf %181, %196 : vector<4x256xf32>
    %c0_132 = arith.constant 0 : index
    %c3_133 = arith.constant 3 : index
    %c17_134 = arith.constant 17 : index
    %198 = vector.load %arg1[%c0_132, %c3_133, %c17_134] : memref<1x4x384xf32, #tpu.memory_space<vmem>>, vector<1x1x256xf32>
    %199 = vector.shape_cast %198 : vector<1x1x256xf32> to vector<1x256xf32>
    %c76 = arith.constant 76 : index
    %c0_135 = arith.constant 0 : index
    %200 = vector.load %arg2[%c76, %c0_135] : memref<144x256xf32, #tpu.memory_space<vmem>>, vector<4x256xf32>
    %201 = vector.broadcast %199 : vector<1x256xf32> to vector<4x256xf32>
    %202 = arith.mulf %200, %201 : vector<4x256xf32>
    %203 = arith.addf %186, %202 : vector<4x256xf32>
    %c0_136 = arith.constant 0 : index
    %c3_137 = arith.constant 3 : index
    %c18_138 = arith.constant 18 : index
    %204 = vector.load %arg1[%c0_136, %c3_137, %c18_138] : memref<1x4x384xf32, #tpu.memory_space<vmem>>, vector<1x1x256xf32>
    %205 = vector.shape_cast %204 : vector<1x1x256xf32> to vector<1x256xf32>
    %c92 = arith.constant 92 : index
    %c0_139 = arith.constant 0 : index
    %206 = vector.load %arg2[%c92, %c0_139] : memref<144x256xf32, #tpu.memory_space<vmem>>, vector<4x256xf32>
    %207 = vector.broadcast %205 : vector<1x256xf32> to vector<4x256xf32>
    %208 = arith.mulf %206, %207 : vector<4x256xf32>
    %209 = arith.addf %191, %208 : vector<4x256xf32>
    %c0_140 = arith.constant 0 : index
    %c3_141 = arith.constant 3 : index
    %c32_142 = arith.constant 32 : index
    %210 = vector.load %arg1[%c0_140, %c3_141, %c32_142] : memref<1x4x384xf32, #tpu.memory_space<vmem>>, vector<1x1x256xf32>
    %211 = vector.shape_cast %210 : vector<1x1x256xf32> to vector<1x256xf32>
    %c108 = arith.constant 108 : index
    %c0_143 = arith.constant 0 : index
    %212 = vector.load %arg2[%c108, %c0_143] : memref<144x256xf32, #tpu.memory_space<vmem>>, vector<4x256xf32>
    %213 = vector.broadcast %211 : vector<1x256xf32> to vector<4x256xf32>
    %214 = arith.mulf %212, %213 : vector<4x256xf32>
    %215 = arith.addf %197, %214 : vector<4x256xf32>
    %c0_144 = arith.constant 0 : index
    %c3_145 = arith.constant 3 : index
    %c33_146 = arith.constant 33 : index
    %216 = vector.load %arg1[%c0_144, %c3_145, %c33_146] : memref<1x4x384xf32, #tpu.memory_space<vmem>>, vector<1x1x256xf32>
    %217 = vector.shape_cast %216 : vector<1x1x256xf32> to vector<1x256xf32>
    %c124 = arith.constant 124 : index
    %c0_147 = arith.constant 0 : index
    %218 = vector.load %arg2[%c124, %c0_147] : memref<144x256xf32, #tpu.memory_space<vmem>>, vector<4x256xf32>
    %219 = vector.broadcast %217 : vector<1x256xf32> to vector<4x256xf32>
    %220 = arith.mulf %218, %219 : vector<4x256xf32>
    %221 = arith.addf %203, %220 : vector<4x256xf32>
    %c0_148 = arith.constant 0 : index
    %c3_149 = arith.constant 3 : index
    %c34_150 = arith.constant 34 : index
    %222 = vector.load %arg1[%c0_148, %c3_149, %c34_150] : memref<1x4x384xf32, #tpu.memory_space<vmem>>, vector<1x1x256xf32>
    %223 = vector.shape_cast %222 : vector<1x1x256xf32> to vector<1x256xf32>
    %c140 = arith.constant 140 : index
    %c0_151 = arith.constant 0 : index
    %224 = vector.load %arg2[%c140, %c0_151] : memref<144x256xf32, #tpu.memory_space<vmem>>, vector<4x256xf32>
    %225 = vector.broadcast %223 : vector<1x256xf32> to vector<4x256xf32>
    %226 = arith.mulf %224, %225 : vector<4x256xf32>
    %227 = arith.addf %209, %226 : vector<4x256xf32>
    %c12_152 = arith.constant 12 : index
    %c0_153 = arith.constant 0 : index
    %228 = vector.load %arg3[%c12_152, %c0_153] : memref<16x1xf32, #tpu.memory_space<vmem>>, vector<4x1xf32>
    %229 = vector.broadcast %228 : vector<4x1xf32> to vector<4x256xf32>
    %230 = arith.addf %215, %229 : vector<4x256xf32>
    %231 = arith.addf %230, %221 : vector<4x256xf32>
    %232 = arith.addf %231, %227 : vector<4x256xf32>
    %c0_154 = arith.constant 0 : index
    %c12_155 = arith.constant 12 : index
    %c0_156 = arith.constant 0 : index
    %233 = vector.load %arg5[%c0_154, %c12_155, %c0_156] : memref<1x16x256xf32, #tpu.memory_space<vmem>>, vector<1x4x256xf32>
    %234 = vector.shape_cast %233 : vector<1x4x256xf32> to vector<4x256xf32>
    %235 = vector.shape_cast %232 : vector<4x256xf32> to vector<1x4x256xf32>
    tpu.vector_store %arg5[%c0_154, %c12_155, %c0_156], %235 {strides = array<i32>} : memref<1x16x256xf32, #tpu.memory_space<vmem>>, vector<1x4x256xf32>,
    %236 = vector.extract_strided_slice %173 {offsets = [3, 0], sizes = [1, 256], strides = [1, 1]} : vector<4x256xf32> to vector<1x256xf32>
    %237 = vector.extract_strided_slice %114 {offsets = [2, 0], sizes = [1, 256], strides = [1, 1]} : vector<4x256xf32> to vector<1x256xf32>
    %238 = arith.maximumf %236, %237 : vector<1x256xf32>
    %239 = vector.extract_strided_slice %173 {offsets = [2, 0], sizes = [1, 256], strides = [1, 1]} : vector<4x256xf32> to vector<1x256xf32>
    %240 = vector.extract_strided_slice %55 {offsets = [2, 0], sizes = [1, 256], strides = [1, 1]} : vector<4x256xf32> to vector<1x256xf32>
    %241 = arith.maximumf %239, %240 : vector<1x256xf32>
    %242 = arith.addf %238, %241 : vector<1x256xf32>
    %243 = vector.extract_strided_slice %55 {offsets = [0, 0], sizes = [1, 256], strides = [1, 1]} : vector<4x256xf32> to vector<1x256xf32>
    %244 = vector.extract_strided_slice %232 {offsets = [2, 0], sizes = [1, 256], strides = [1, 1]} : vector<4x256xf32> to vector<1x256xf32>
    %245 = arith.maximumf %243, %244 : vector<1x256xf32>
    %246 = arith.addf %242, %245 : vector<1x256xf32>
    %247 = vector.extract_strided_slice %232 {offsets = [0, 0], sizes = [1, 256], strides = [1, 1]} : vector<4x256xf32> to vector<1x256xf32>
    %248 = vector.extract_strided_slice %173 {offsets = [2, 0], sizes = [1, 256], strides = [1, 1]} : vector<4x256xf32> to vector<1x256xf32>
    %249 = arith.maximumf %247, %248 : vector<1x256xf32>
    %250 = arith.addf %246, %249 : vector<1x256xf32>
    %cst = arith.constant 2.500000e-01 : f32
    %251 = vector.broadcast %cst : f32 to vector<1x256xf32>
    %252 = arith.mulf %250, %251 : vector<1x256xf32>
    %253 = vector.extract_strided_slice %114 {offsets = [0, 0], sizes = [1, 256], strides = [1, 1]} : vector<4x256xf32> to vector<1x256xf32>
    %254 = vector.extract_strided_slice %232 {offsets = [1, 0], sizes = [1, 256], strides = [1, 1]} : vector<4x256xf32> to vector<1x256xf32>
    %255 = arith.maximumf %253, %254 : vector<1x256xf32>
    %256 = vector.extract_strided_slice %173 {offsets = [0, 0], sizes = [1, 256], strides = [1, 1]} : vector<4x256xf32> to vector<1x256xf32>
    %257 = vector.extract_strided_slice %114 {offsets = [1, 0], sizes = [1, 256], strides = [1, 1]} : vector<4x256xf32> to vector<1x256xf32>
    %258 = arith.maximumf %256, %257 : vector<1x256xf32>
    %259 = arith.addf %255, %258 : vector<1x256xf32>
    %260 = vector.extract_strided_slice %55 {offsets = [1, 0], sizes = [1, 256], strides = [1, 1]} : vector<4x256xf32> to vector<1x256xf32>
    %261 = vector.extract_strided_slice %173 {offsets = [0, 0], sizes = [1, 256], strides = [1, 1]} : vector<4x256xf32> to vector<1x256xf32>
    %262 = arith.maximumf %260, %261 : vector<1x256xf32>
    %263 = arith.addf %259, %262 : vector<1x256xf32>
    %264 = vector.extract_strided_slice %232 {offsets = [2, 0], sizes = [1, 256], strides = [1, 1]} : vector<4x256xf32> to vector<1x256xf32>
    %265 = vector.extract_strided_slice %173 {offsets = [1, 0], sizes = [1, 256], strides = [1, 1]} : vector<4x256xf32> to vector<1x256xf32>
    %266 = arith.maximumf %264, %265 : vector<1x256xf32>
    %267 = arith.addf %263, %266 : vector<1x256xf32>
    %cst_157 = arith.constant 2.500000e-01 : f32
    %268 = vector.broadcast %cst_157 : f32 to vector<1x256xf32>
    %269 = arith.mulf %267, %268 : vector<1x256xf32>
    %270 = vector.extract_strided_slice %114 {offsets = [3, 0], sizes = [1, 256], strides = [1, 1]} : vector<4x256xf32> to vector<1x256xf32>
    %271 = vector.extract_strided_slice %55 {offsets = [1, 0], sizes = [1, 256], strides = [1, 1]} : vector<4x256xf32> to vector<1x256xf32>
    %272 = arith.maximumf %270, %271 : vector<1x256xf32>
    %273 = vector.extract_strided_slice %232 {offsets = [3, 0], sizes = [1, 256], strides = [1, 1]} : vector<4x256xf32> to vector<1x256xf32>
    %274 = vector.extract_strided_slice %114 {offsets = [2, 0], sizes = [1, 256], strides = [1, 1]} : vector<4x256xf32> to vector<1x256xf32>
    %275 = arith.maximumf %273, %274 : vector<1x256xf32>
    %276 = arith.addf %272, %275 : vector<1x256xf32>
    %277 = vector.extract_strided_slice %114 {offsets = [0, 0], sizes = [1, 256], strides = [1, 1]} : vector<4x256xf32> to vector<1x256xf32>
    %278 = vector.extract_strided_slice %55 {offsets = [2, 0], sizes = [1, 256], strides = [1, 1]} : vector<4x256xf32> to vector<1x256xf32>
    %279 = arith.maximumf %277, %278 : vector<1x256xf32>
    %280 = arith.addf %276, %279 : vector<1x256xf32>
    %281 = vector.extract_strided_slice %232 {offsets = [1, 0], sizes = [1, 256], strides = [1, 1]} : vector<4x256xf32> to vector<1x256xf32>
    %282 = vector.extract_strided_slice %55 {offsets = [3, 0], sizes = [1, 256], strides = [1, 1]} : vector<4x256xf32> to vector<1x256xf32>
    %283 = arith.maximumf %281, %282 : vector<1x256xf32>
    %284 = arith.addf %280, %283 : vector<1x256xf32>
    %cst_158 = arith.constant 2.500000e-01 : f32
    %285 = vector.broadcast %cst_158 : f32 to vector<1x256xf32>
    %286 = arith.mulf %284, %285 : vector<1x256xf32>
    %287 = vector.extract_strided_slice %173 {offsets = [1, 0], sizes = [1, 256], strides = [1, 1]} : vector<4x256xf32> to vector<1x256xf32>
    %288 = vector.extract_strided_slice %114 {offsets = [3, 0], sizes = [1, 256], strides = [1, 1]} : vector<4x256xf32> to vector<1x256xf32>
    %289 = arith.maximumf %287, %288 : vector<1x256xf32>
    %290 = vector.extract_strided_slice %173 {offsets = [3, 0], sizes = [1, 256], strides = [1, 1]} : vector<4x256xf32> to vector<1x256xf32>
    %291 = vector.extract_strided_slice %55 {offsets = [3, 0], sizes = [1, 256], strides = [1, 1]} : vector<4x256xf32> to vector<1x256xf32>
    %292 = arith.maximumf %290, %291 : vector<1x256xf32>
    %293 = arith.addf %289, %292 : vector<1x256xf32>
    %294 = vector.extract_strided_slice %55 {offsets = [0, 0], sizes = [1, 256], strides = [1, 1]} : vector<4x256xf32> to vector<1x256xf32>
    %295 = vector.extract_strided_slice %114 {offsets = [1, 0], sizes = [1, 256], strides = [1, 1]} : vector<4x256xf32> to vector<1x256xf32>
    %296 = arith.maximumf %294, %295 : vector<1x256xf32>
    %297 = arith.addf %293, %296 : vector<1x256xf32>
    %298 = vector.extract_strided_slice %232 {offsets = [3, 0], sizes = [1, 256], strides = [1, 1]} : vector<4x256xf32> to vector<1x256xf32>
    %299 = vector.extract_strided_slice %232 {offsets = [0, 0], sizes = [1, 256], strides = [1, 1]} : vector<4x256xf32> to vector<1x256xf32>
    %300 = arith.maximumf %298, %299 : vector<1x256xf32>
    %301 = arith.addf %297, %300 : vector<1x256xf32>
    %cst_159 = arith.constant 2.500000e-01 : f32
    %302 = vector.broadcast %cst_159 : f32 to vector<1x256xf32>
    %303 = arith.mulf %301, %302 : vector<1x256xf32>
    %304 = tpu.concatenate %252, %269, %286, %303 in 0 : vector<1x256xf32>, vector<1x256xf32>, vector<1x256xf32>, vector<1x256xf32> -> vector<4x256xf32>
    %c0_160 = arith.constant 0 : index
    %c0_161 = arith.constant 0 : index
    %c0_162 = arith.constant 0 : index
    %305 = vector.load %arg4[%c0_160, %c0_161, %c0_162] : memref<1x4x256xf32, #tpu.memory_space<vmem>>, vector<1x4x256xf32>
    %306 = vector.shape_cast %305 : vector<1x4x256xf32> to vector<4x256xf32>
    %307 = vector.shape_cast %304 : vector<4x256xf32> to vector<1x4x256xf32>
    tpu.vector_store %arg4[%c0_160, %c0_161, %c0_162], %307 {strides = array<i32>} : memref<1x4x256xf32, #tpu.memory_space<vmem>>, vector<1x4x256xf32>,
    return
  }
  func.func @transform_0(%arg0: i32) -> (i32, i32, i32) {
    %c0_i32 = arith.constant 0 : i32
    %c0_i32_0 = arith.constant 0 : i32
    %c0_i32_1 = arith.constant 0 : i32
    return %arg0, %c0_i32, %c0_i32_0 : i32, i32, i32
  }
  func.func @transform_1(%arg0: i32) -> (i32, i32) {
    %c0_i32 = arith.constant 0 : i32
    %c0_i32_0 = arith.constant 0 : i32
    %c0_i32_1 = arith.constant 0 : i32
    return %c0_i32, %c0_i32_0 : i32, i32
  }
  func.func @transform_2(%arg0: i32) -> (i32, i32) {
    %c0_i32 = arith.constant 0 : i32
    %c0_i32_0 = arith.constant 0 : i32
    %c0_i32_1 = arith.constant 0 : i32
    return %c0_i32, %c0_i32_0 : i32, i32
  }
  func.func @transform_3(%arg0: i32) -> (i32, i32, i32) {
    %c0_i32 = arith.constant 0 : i32
    %c0_i32_0 = arith.constant 0 : i32
    %c0_i32_1 = arith.constant 0 : i32
    return %arg0, %c0_i32, %c0_i32_0 : i32, i32, i32
  }
  func.func @transform_4(%arg0: i32) -> (i32, i32, i32) {
    %c0_i32 = arith.constant 0 : i32
    %c0_i32_0 = arith.constant 0 : i32
    %c0_i32_1 = arith.constant 0 : i32
    return %arg0, %c0_i32, %c0_i32_0 : i32, i32, i32
  }
}

</mosaic_0001>

<bundles_post_ra>
// kernel: tpu_custom_call.1
= control target key start
LH: loop header
LB: loop body
LE: loop exit
PB: predicated region body
PF: predicated region fallthrough
CT: control target
= control target key end

     0   :  { %10 = vsyncpa [#allocation3], 0  ;;  %s2393_s0 = inlined_call_operand.hbm [shape: f32[2,4,384], index: 0, kind: input, shape index: {}]   ;;  %s2394_s1 = inlined_call_operand.hbm [shape: f32[144,256], index: 1, kind: input, shape index: {}]   ;;  %s2395_s2 = inlined_call_operand.vmem [shape: f32[16,1], index: 2, kind: input, shape index: {}]   ;;  %s2396_s3 = inlined_call_operand.hbm [shape: f32[2,4,256], index: 3, kind: output, shape index: {0}]   ;;  %s2397_s4 = inlined_call_operand.hbm [shape: f32[2,16,256], index: 4, kind: output, shape index: {1}]  }
   0x1   :  { %12 = vsyncpa [#allocation3 + $0x1], 0 }
   0x2   :  { %13 = vsyncpa [#allocation6], 0 }
   0x3   :  { %14 = vsyncpa [#allocation4], 0 }
   0x4   :  { %16 = vsyncpa [#allocation4 + $0x1], 0 }
   0x5   :  { %17 = vsyncpa [#allocation9], 0 }
   0x6   :  { %19 = vsyncpa [#allocation9 + $0x1], 0  ;;  %s1605_s15 = smov 0   ;;  %s1607_s16 = smov 0  }
   0x7   :  { %s1609_s17 = smov 0   ;;  %s1611_s18 = smov 0  }
   0x8 LB: > { %s1626_s19 = sadd.s32 4294967295, %s1561_s18   ;;  %s1296_s20 = sadd.s32 4294967294, %s1561_s18   ;;  %s1561_s18 = sphi %s1611_s18, %s2417_s18   ;;  %s1557_s17 = sphi %s1609_s17, %s2416_s17   ;;  %s1553_s16 = sphi %s1607_s16, %s2415_s16   ;;  %s1549_s15 = sphi %s1605_s15, %s2414_s15  }
   0x9   : > { %p45_p0 = scmp.ne.s32.totalorder %s1553_s16, %s1549_s15  ;;  %p2398_p1 = scmp.eq.s32.totalorder %s1626_s19, 0 }
   0xa   : > { %p117_p3 = scmp.eq.s32.totalorder %s1296_s20, 1  ;;  %p1297_p5 = scmp.ge.s32.totalorder %s1561_s18, 1 }
   0xb   : > { %p1635_p4 = por %p2398_p1, %p45_p0  ;;  %p150_p7 = scmp.lt.s32.totalorder %s1561_s18, 3 }
   0xc   : > { %p1640_p6 = por %p117_p3, %p45_p0  ;;  %s1563_s24 = smov [#allocation5]  }
   0xd   : > { %s2401_s21 = scalar_select %p1635_p4, 1, 0 }
   0xe   : > { %s2402_s22 = scalar_select %p1640_p6, 1, 0 }
   0xf   : > { %p1645_p8 = pnand %p1297_p5, %p150_p7  ;;  %s162_s25 = sshll.u32 %s1563_s24, 4  ;;  %s1649_s25 = int_to_ptr.vmem [resolvable:$true] %s162_s25 }
  0x10   : > { %s1661_s27 = sadd.s32 1, %s1561_s18   ;;  %s32_s28 = sadd.s32 1, %s1557_s17 }
  0x11   : > { %s2403_s23 = scalar_select %p1645_p8, 1, 0 }
  0x12   : > { %p1334_p9 = pneg %p1645_p8  ;;  %s29_s29 = ssub.s32 %s1561_s18, %s1661_s27 }
  0x13   : > { %s1401_s6 = scalar_lea.hbm %s2394_s1, 4608 }
  0x14   : > { %p1656_p11 = pnand %p1334_p9, %p2398_p1  ;;  %p1402_p12 = scmp.ne.s32.totalorder %s2394_s1, %s1401_s6 }
  0x15   : > { %p1408_p5 = scmp.lt.u32.totalorder %s1401_s6, %s2394_s1 }
  0x16   : > { %p1403_p13 = pneg %p1656_p11 }
  0x18   : > { %p1404_p0 = pnand %p1403_p13, %p1402_p12 }
  0x1a   : > { %p1405_p3 = pneg %p1404_p0 }
  0x1c   : > { %p1410_p7 = pnand %p1408_p5, %p1405_p3 }
  0x1e   : > { %1413 = shalt.err (!%p1410_p7)
}
  0x1f   : > { %s1414_s11 = scalar_lea.vmem %s1649_s25, 4608  ;;  %p1422_p2 = scmp.lt.s32.totalorder %s1649_s25, %s1649_s25 }
  0x20   : > { %p1415_p9 = scmp.ne.s32.totalorder %s1649_s25, %s1414_s11  ;;  %p1423_p6 = scmp.lt.s32.totalorder %s1414_s11, %s1414_s11 }
  0x22   : > { %p1417_p10 = pnand %p1415_p9, %p1403_p13  ;;  %p1424_p4 = por %p1423_p6, %p1422_p2 }
  0x24   : > { %p1418_p1 = pneg %p1417_p10 }
  0x26   : > { %p1425_p8 = pnand %p1424_p4, %p1418_p1 }
  0x28   : > { %1428 = shalt.err (!%p1425_p8)
}
  0x29   : > { %s1564_s12 = smov 256   ;;  %s1565_s13 = smov 16  }
  0x2a   : > { %1337 = dma.hbm_to_vmem [thread:$0]  (!%p1656_p11), %s2394_s1, 4608, %s1649_s25, [#allocation6], %s1564_s12, %s1564_s12, %s1565_s13  }
  0x2b   : > { %p30_p2 = scmp.eq.s32.totalorder %s29_s29, 0  ;;  %p39_p1 = scmp.ne.s32.totalorder %s1557_s17, %s1553_s16 }
  0x2c   : > { %p40_p4 = scmp.eq.s32.totalorder %s1561_s18, 0  ;;  %p1350_p6 = scmp.lt.s32.totalorder %s1561_s18, 2 }
  0x2d   : > { %s1692_s24 = scalar_select %p30_p2, %s1557_s17, %s32_s28  }
  0x2e   : > { %p41_p8 = por %p40_p4, %p39_p1  ;;  %p2405_p10 = scmp.eq.s32.totalorder %s1626_s19, 1 }
  0x2f   : > { %s179_s5 = sand.u32 1, %s1557_s17   ;;  %s1322_s6 = smul.u32 192, %s1561_s18 }
  0x30   : > { %p1696_p12 = por %p2405_p10, %p39_p1  ;;  %s1321_s7 = smul.u32 12, %s179_s5 }
  0x31   : > { %p1702_p13 = pnand %p1350_p6, %p41_p8  ;;  %s1709_s28 = scalar_lea.hbm %s2393_s0, %s1322_s6 }
  0x32   : > { %s183_s8 = scalar_lea.vmem [#allocation2], %s1321_s7  ;;  %s180_s10 = scalar_lea.sflag [#allocation3], %s179_s5 }
  0x33   : > { %s191_s9 = sshll.u32 %s183_s8, 4  ;;  %s1429_s11 = scalar_lea.hbm %s1709_s28, 192  ;;  %s1711_s9 = int_to_ptr.vmem [resolvable:$true] %s191_s9 }
  0x34   : > { %p1430_p11 = scmp.ne.s32.totalorder %s1709_s28, %s1429_s11  ;;  %p1431_p0 = pneg %p1702_p13 }
  0x35   : > { %s1434_s14 = scalar_lea.hbm %s2393_s0, 384  ;;  %p1435_p7 = scmp.lt.u32.totalorder %s1709_s28, %s2393_s0 }
  0x36   : > { %p1432_p3 = pnand %p1431_p0, %p1430_p11  ;;  %p1436_p9 = scmp.lt.u32.totalorder %s1434_s14, %s1429_s11 }
  0x37   : > { %p1438_p1 = scmp.lt.u32.totalorder %s1429_s11, %s1709_s28 }
  0x38   : > { %p1433_p5 = pneg %p1432_p3  ;;  %p1437_p2 = por %p1436_p9, %p1435_p7 }
  0x3a   : > { %p1439_p4 = por %p1438_p1, %p1437_p2 }
  0x3c   : > { %p1440_p6 = pnand %p1439_p4, %p1433_p5 }
  0x3e   : > { %1443 = shalt.err (!%p1440_p6)
}
  0x3f   : > { %s1444_s5 = scalar_lea.vmem %s1711_s9, 192  ;;  %s1566_s7 = smov [#allocation2]  }
  0x40   : > { %p1445_p8 = scmp.ne.s32.totalorder %s1711_s9, %s1444_s5  ;;  %s1449_s25 = sshll.u32 %s1566_s7, 4  ;;  %s1450_s25 = int_to_ptr.vmem [resolvable:$false] %s1449_s25 }
  0x41   : > { %s1451_s29 = scalar_lea.vmem %s1450_s25, 384  ;;  %p1452_p3 = scmp.lt.s32.totalorder %s1711_s9, %s1450_s25 }
  0x42   : > { %p1447_p10 = pnand %p1445_p8, %p1431_p0  ;;  %p1453_p7 = scmp.lt.s32.totalorder %s1451_s29, %s1444_s5 }
  0x44   : > { %p1448_p11 = pneg %p1447_p10  ;;  %p1454_p9 = por %p1453_p7, %p1452_p3 }
  0x46   : > { %p1455_p2 = pnand %p1454_p9, %p1448_p11 }
  0x48   : > { %1458 = shalt.err (!%p1455_p2)
}
  0x49   : > { %1341 = dma.hbm_to_vmem [thread:$0]  (!%p1702_p13), %s1709_s28, 192, %s1711_s9, %s180_s10  }
  0x4a   : > { %p2408_p5 = scmp.ne.s32.totalorder %s2403_s23, 0 }
  0x4b   : > { %s1741_s8 = sand.u32 (!%p2408_p5), 1, %s1553_s16   ;;  %p2409_p0 = scmp.ne.s32.totalorder (!%p2408_p5), %s2401_s21, 0 }
  0x4c   : > { %200 = sbr.rel (%p2408_p5) target bundleno = 479 (0x1df), region = 32  ;;  %s203_s12 = scalar_lea.sflag (!%p2408_p5), [#allocation3], %s1741_s8 }
  0x4d   : > { %s1323_s11 = smul.u32 (!%p2408_p5), 12, %s1741_s8 }
  0x4f   : > { %s1745_s13 = scalar_lea.vmem (!%p2408_p5), [#allocation2], %s1323_s11 }
  0x53   : > { %1532 = dma.done.wait (%p2409_p0), %s203_s12, 192  }
  0x54   : > { %1534 = vsyncadd (%p2409_p0), %s203_s12, 4294967104  ;;  %p2410_p13 = scmp.eq.s32.totalorder %s1626_s19, 0 }
  0x56   : > { %1536 = dma.done.wait (%p2410_p13), [#allocation6], 4608   ;;  %p2411_p1 = pmov %p2410_p13 }
  0x57   : > { %v244_v0 = vlaneseq  ;;  %v1567_v1 = vmov 0   ;;  %v256_v6 = vld [vmem:[%s1745_s13] ss:$4 sm:$0x7]  ;;  %s1568_s21 = smov 127   ;;  %s1569_s23 = smov 126  }
  0x58   : > { %1538 = vsyncadd (%p2411_p1), [#allocation6], 4294962688  ;;  %1399 = vset.pattern.permute.xlu0 %v1567_v1  ;;  %1400 = vset.pattern.permute.xlu1 %v1567_v1  ;;  %s1570_s26 = smov 112   ;;  %s1571_s28 = smov 111   ;;  %v402_v12 = vld [vmem:[%s2395_s2] sm:$0xf] }
  0x59   : > { %v245_v2 = vshrl.u32 %v244_v0, 7  ;;  %s1572_s9 = smov 110   ;;  %s1573_s10 = smov 96   ;;  %v1306_v10 = vld [vmem:[%s1745_s13 + $0x1] ss:$4 sm:$0x7] }
  0x5a   : > { %s1574_s14 = smov 95   ;;  %s1575_s20 = smov 94   ;;  %v572_v15 = vld [vmem:[%s2395_s2 + $0x4] sm:$0xf]  ;;  %v913_v20 = vld [vmem:[%s2395_s2 + $0xc] sm:$0xf] }
  0x5b   : > { %v1755_v3 = vsub.s32 0, %v245_v2  ;;  %v1757_v4 = vsub.s32 2, %v245_v2  ;;  %v1759_v5 = vsub.s32 1, %v245_v2  ;;  %v1308_v16 = vld [vmem:[%s1745_s13 + $0x2] ss:$4 sm:$0x7] }
  0x5c   : > { %v1310_v21 = vld [vmem:[%s1745_s13 + $0x3] ss:$4 sm:$0x7]  ;;  %v240_v47 = vld [vmem:[%s1745_s13] ss:$4 sm:$0x3] }
  0x5d   : > { %v271_v7 = vrot.slane %v256_v6, %v1757_v4  ;;  %v263_v8 = vrot.slane %v256_v6, %v1755_v3  ;;  %v267_v9 = vrot.slane %v256_v6, %v1759_v5  ;;  %v441_v11 = vrot.slane %v1306_v10, %v1755_v3  ;;  %v743_v25 = vld [vmem:[%s2395_s2 + $0x8] sm:$0xf]  ;;  %v241_v51 = vld [vmem:[#allocation5] sm:$0xf]  ;;  %v242_v52 = vld [vmem:[#allocation5 + $0x8] sm:$0xf] }
  0x5e   : > { %v445_v13 = vrot.slane %v1306_v10, %v1759_v5  ;;  %v449_v14 = vrot.slane %v1306_v10, %v1757_v4  ;;  %v1825_v17 = vrot.slane %v1308_v16, %v1755_v3  ;;  %v1828_v18 = vrot.slane %v1308_v16, %v1759_v5  ;;  %v257_v55 = vld [vmem:[#allocation5 + $0x20] sm:$0xf]  ;;  %v258_v56 = vld [vmem:[#allocation5 + $0x28] sm:$0xf]  ;;  %s1576_s5 = smov [#allocation8]  }
  0x5f   : > { %276 = vrot.lane.b32.xlu1 %v271_v7, %s1568_s21  ;;  %272 = vrot.lane.b32.xlu0 %v263_v8, %s1568_s21  ;;  %v1833_v19 = vrot.slane %v1308_v16, %v1757_v4  ;;  %v1858_v24 = vrot.slane %v1310_v21, %v1755_v3  ;;  %v1868_v28 = vrot.slane %v1310_v21, %v1759_v5  ;;  %vm278_vm0 = vcmask 1039360   ;;  %v300_v59 = vld [vmem:[#allocation5 + $0x60] sm:$0xf]  ;;  %v301_v62 = vld [vmem:[#allocation5 + $0x68] sm:$0xf]  ;;  %s1463_s7 = sshll.u32 %s1576_s5, 4  ;;  %s1464_s7 = int_to_ptr.vmem [resolvable:$false] %s1463_s7 }
  0x60   : > { %v1871_v29 = vrot.slane %v1310_v21, %v1757_v4  ;;  %vm308_vm1 = vcmask 916480   ;;  %v247_v49 = vrot.slane %v240_v47, %v1755_v3  ;;  %v251_v50 = vrot.slane %v240_v47, %v1759_v5  ;;  %v317_v4 = vld [vmem:[#allocation5 + $0x80] sm:$0xf]  ;;  %v318_v6 = vld [vmem:[#allocation5 + $0x88] sm:$0xf]  ;;  %s1465_s25 = scalar_lea.vmem %s1464_s7, 1024 }
  0x61   : > { %vm325_vm2 = vcmask 908288   ;;  %vm293_vm3 = vcmask 1031168   ;;  %vm342_vm4 = vcmask 900096   ;;  %vm359_vm5 = vcmask 785408   ;;  %v335_v21 = vld [vmem:[#allocation5 + $0xa8] sm:$0xf] }
  0x62   : > { %v254_v61 = vmul.f32 %v247_v49, %v241_v51  ;;  %v255_v63 = vmul.f32 %v251_v50, %v242_v52  ;;  %vm376_vm6 = vcmask 777216   ;;  %vm393_vm7 = vcmask 769024   ;;  %v386_v49 = vld [vmem:[#allocation5 + $0x108] sm:$0xf] }
  0x63   : > { %287 = vrot.lane.b32.xlu1 %v263_v8, %s1569_s23  ;;  %274 = vrot.lane.b32.xlu0 %v267_v9, %s1568_s21 }
  0x67   : > { %291 = vrot.lane.b32.xlu1 %v271_v7, %s1569_s23  ;;  %289 = vrot.lane.b32.xlu0 %v267_v9, %s1569_s23 }
  0x6b   : > { %304 = vrot.lane.b32.xlu1 %v267_v9, %s1570_s26  ;;  %302 = vrot.lane.b32.xlu0 %v263_v8, %s1570_s26 }
  0x6f   : > { %319 = vrot.lane.b32.xlu1 %v263_v8, %s1571_s28  ;;  %306 = vrot.lane.b32.xlu0 %v271_v7, %s1570_s26 }
  0x73   : > { %323 = vrot.lane.b32.xlu1 %v271_v7, %s1571_s28  ;;  %321 = vrot.lane.b32.xlu0 %v267_v9, %s1571_s28 }
  0x77   : > { %338 = vrot.lane.b32.xlu1 %v267_v9, %s1572_s9  ;;  %336 = vrot.lane.b32.xlu0 %v263_v8, %s1572_s9 }
  0x7b   : > { %353 = vrot.lane.b32.xlu1 %v263_v8, %s1573_s10  ;;  %340 = vrot.lane.b32.xlu0 %v271_v7, %s1572_s9 }
  0x7f   : > { %357 = vrot.lane.b32.xlu1 %v271_v7, %s1573_s10  ;;  %355 = vrot.lane.b32.xlu0 %v267_v9, %s1573_s10 }
  0x83   : > { %372 = vrot.lane.b32.xlu1 %v267_v9, %s1574_s14  ;;  %370 = vrot.lane.b32.xlu0 %v263_v8, %s1574_s14 }
  0x87   : > { %387 = vrot.lane.b32.xlu1 %v263_v8, %s1575_s20  ;;  %374 = vrot.lane.b32.xlu0 %v271_v7, %s1574_s14 }
  0x8b   : > { %391 = vrot.lane.b32.xlu1 %v271_v7, %s1575_s20  ;;  %389 = vrot.lane.b32.xlu0 %v267_v9, %s1575_s20 }
  0x8f   : > { %450 = vrot.lane.b32.xlu1 %v441_v11, %s1568_s21  ;;  %405 = vperm.xlu0 %1399, %v402_v12  }
  0x93   : > { %452 = vrot.lane.b32.xlu1 %v445_v13, %s1568_s21  ;;  %454 = vrot.lane.b32.xlu0 %v449_v14, %s1568_s21 }
  0x97   : > { %464 = vrot.lane.b32.xlu1 %v441_v11, %s1569_s23  ;;  %466 = vrot.lane.b32.xlu0 %v445_v13, %s1569_s23 }
  0x9b   : > { %468 = vrot.lane.b32.xlu1 %v449_v14, %s1569_s23  ;;  %478 = vrot.lane.b32.xlu0 %v441_v11, %s1570_s26 }
  0x9f   : > { %480 = vrot.lane.b32.xlu1 %v445_v13, %s1570_s26  ;;  %482 = vrot.lane.b32.xlu0 %v449_v14, %s1570_s26 }
  0xa3   : > { %494 = vrot.lane.b32.xlu1 %v441_v11, %s1571_s28  ;;  %496 = vrot.lane.b32.xlu0 %v445_v13, %s1571_s28 }
  0xa7   : > { %498 = vrot.lane.b32.xlu1 %v449_v14, %s1571_s28  ;;  %510 = vrot.lane.b32.xlu0 %v441_v11, %s1572_s9 }
  0xab   : > { %512 = vrot.lane.b32.xlu1 %v445_v13, %s1572_s9  ;;  %514 = vrot.lane.b32.xlu0 %v449_v14, %s1572_s9 }
  0xaf   : > { %526 = vrot.lane.b32.xlu1 %v441_v11, %s1573_s10  ;;  %528 = vrot.lane.b32.xlu0 %v445_v13, %s1573_s10 }
  0xb3   : > { %530 = vrot.lane.b32.xlu1 %v449_v14, %s1573_s10  ;;  %542 = vrot.lane.b32.xlu0 %v441_v11, %s1574_s14 }
  0xb7   : > { %544 = vrot.lane.b32.xlu1 %v445_v13, %s1574_s14  ;;  %546 = vrot.lane.b32.xlu0 %v449_v14, %s1574_s14 }
  0xbb   : > { %558 = vrot.lane.b32.xlu1 %v441_v11, %s1575_s20  ;;  %560 = vrot.lane.b32.xlu0 %v445_v13, %s1575_s20  ;;  %v334_v11 = vld [vmem:[#allocation5 + $0xa0] sm:$0xf] }
  0xbc   : > { %v351_v13 = vld [vmem:[#allocation5 + $0xc0] sm:$0xf] }
  0xbf   : > { %562 = vrot.lane.b32.xlu1 %v449_v14, %s1575_s20  ;;  %575 = vperm.xlu0 %1399, %v572_v15   ;;  %v352_v14 = vld [vmem:[#allocation5 + $0xc8] sm:$0xf] }
  0xc3   : > { %621 = vrot.lane.b32.xlu1 %v1825_v17, %s1568_s21  ;;  %623 = vrot.lane.b32.xlu0 %v1828_v18, %s1568_s21 }
  0xc7   : > { %625 = vrot.lane.b32.xlu1 %v1833_v19, %s1568_s21  ;;  %635 = vrot.lane.b32.xlu0 %v1825_v17, %s1569_s23 }
  0xcb   : > { %637 = vrot.lane.b32.xlu1 %v1828_v18, %s1569_s23  ;;  %639 = vrot.lane.b32.xlu0 %v1833_v19, %s1569_s23 }
  0xcf   : > { %916 = vperm.xlu1 %1400, %v913_v20   ;;  %649 = vrot.lane.b32.xlu0 %v1825_v17, %s1570_s26 }
  0xd1   : > { %v1851_v22 = vpop.permute.xlu1 %276  ;;  %v273_v23 = vpop.permute.xlu0 %272 }
  0xd3   : > { %651 = vrot.lane.b32.xlu1 %v1828_v18, %s1570_s26  ;;  %653 = vrot.lane.b32.xlu0 %v1833_v19, %s1570_s26 }
  0xd5   : > { %v1863_v26 = vpop.permute.xlu1 %287  ;;  %v275_v27 = vpop.permute.xlu0 %274 }
  0xd6   : > { %v279_v57 = vsel %vm278_vm0, %v273_v23, %v275_v27  ;;  %v280_v58 = vsel %vm278_vm0, %v275_v27, %v1851_v22  ;;  %v368_v23 = vld [vmem:[#allocation5 + $0xe0] sm:$0xf] }
  0xd7   : > { %746 = vperm.xlu1 %1400, %v743_v25   ;;  %819 = vrot.lane.b32.xlu0 %v1858_v24, %s1570_s26  ;;  %v283_v1 = vmul.f32 %v279_v57, %v257_v55  ;;  %v284_v2 = vmul.f32 %v280_v58, %v258_v56 }
  0xd9   : > { %v1873_v30 = vpop.permute.xlu1 %291  ;;  %v1875_v31 = vpop.permute.xlu0 %289 }
  0xdb   : > { %821 = vrot.lane.b32.xlu1 %v1868_v28, %s1570_s26  ;;  %823 = vrot.lane.b32.xlu0 %v1871_v29, %s1570_s26 }
  0xdd   : > { %v305_v32 = vpop.permute.xlu1 %304  ;;  %v303_v33 = vpop.permute.xlu0 %302 }
  0xde   : > { %v309_v60 = vsel %vm308_vm1, %v303_v33, %v305_v32 }
  0xdf   : > { %665 = vrot.lane.b32.xlu1 %v1825_v17, %s1571_s28  ;;  %667 = vrot.lane.b32.xlu0 %v1828_v18, %s1571_s28  ;;  %v313_v10 = vmul.f32 %v309_v60, %v300_v59 }
  0xe1   : > { %v320_v34 = vpop.permute.xlu1 %319  ;;  %v307_v35 = vpop.permute.xlu0 %306  ;;  %v315_v51 = vadd.f32 %v313_v10, %v254_v61 }
  0xe2   : > { %v310_v0 = vsel %vm308_vm1, %v305_v32, %v307_v35  ;;  %v294_v32 = vsel %vm293_vm3, %v1863_v26, %v1875_v31  ;;  %v369_v35 = vld [vmem:[#allocation5 + $0xe8] sm:$0xf]  ;;  %v385_v26 = vld [vmem:[#allocation5 + $0x100] sm:$0xf] }
  0xe3   : > { %669 = vrot.lane.b32.xlu1 %v1833_v19, %s1571_s28  ;;  %697 = vrot.lane.b32.xlu0 %v1825_v17, %s1573_s10  ;;  %v314_v20 = vmul.f32 %v310_v0, %v301_v62 }
  0xe5   : > { %v324_v36 = vpop.permute.xlu1 %323  ;;  %v322_v37 = vpop.permute.xlu0 %321  ;;  %v316_v52 = vadd.f32 %v314_v20, %v255_v63 }
  0xe6   : > { %v326_v7 = vsel %vm325_vm2, %v320_v34, %v322_v37  ;;  %v327_v8 = vsel %vm325_vm2, %v322_v37, %v324_v36  ;;  %v285_v37 = vld [vmem:[#allocation5 + $0x40] sm:$0xf] }
  0xe7   : > { %699 = vrot.lane.b32.xlu1 %v1828_v18, %s1573_s10  ;;  %701 = vrot.lane.b32.xlu0 %v1833_v19, %s1573_s10  ;;  %v330_v33 = vmul.f32 %v326_v7, %v317_v4  ;;  %v331_v34 = vmul.f32 %v327_v8, %v318_v6 }
  0xe9   : > { %v1893_v38 = vpop.permute.xlu1 %338  ;;  %v337_v39 = vpop.permute.xlu0 %336  ;;  %v332_v55 = vadd.f32 %v330_v33, %v283_v1  ;;  %v333_v56 = vadd.f32 %v331_v34, %v284_v2 }
  0xea   : > { %v343_v12 = vsel %vm342_vm4, %v337_v39, %v1893_v38  ;;  %v295_v39 = vsel %vm293_vm3, %v1875_v31, %v1873_v30  ;;  %v298_v30 = vmul.f32 %v294_v32, %v285_v37  ;;  %v418_v37 = vld [vmem:[#allocation5] sm:$0xf0] }
  0xeb   : > { %791 = vrot.lane.b32.xlu1 %v1858_v24, %s1568_s21  ;;  %793 = vrot.lane.b32.xlu0 %v1868_v28, %s1568_s21 }
  0xed   : > { %v354_v40 = vpop.permute.xlu1 %353  ;;  %v341_v41 = vpop.permute.xlu0 %340 }
  0xee   : > { %v344_v22 = vsel %vm342_vm4, %v1893_v38, %v341_v41  ;;  %v286_v38 = vld [vmem:[#allocation5 + $0x48] sm:$0xf] }
  0xef   : > { %795 = vrot.lane.b32.xlu1 %v1871_v29, %s1568_s21  ;;  %835 = vrot.lane.b32.xlu0 %v1858_v24, %s1571_s28  ;;  %v299_v31 = vmul.f32 %v295_v39, %v286_v38  ;;  %s1304_s21 = sshll.u32 %s1741_s8, 5  ;;  %v419_v38 = vld [vmem:[#allocation5 + $0x8] sm:$0xf0]  ;;  %v435_v39 = vld [vmem:[#allocation5 + $0x20] sm:$0xf0] }
  0xf1   : > { %v358_v42 = vpop.permute.xlu1 %357  ;;  %v356_v43 = vpop.permute.xlu0 %355 }
  0xf2   : > { %v360_v15 = vsel %vm359_vm5, %v354_v40, %v356_v43  ;;  %v361_v16 = vsel %vm359_vm5, %v356_v43, %v358_v42  ;;  %v347_v40 = vmul.f32 %v343_v12, %v334_v11 }
  0xf3   : > { %837 = vrot.lane.b32.xlu1 %v1868_v28, %s1571_s28  ;;  %839 = vrot.lane.b32.xlu0 %v1871_v29, %s1571_s28  ;;  %v364_v41 = vmul.f32 %v360_v15, %v351_v13  ;;  %v365_v42 = vmul.f32 %v361_v16, %v352_v14 }
  0xf4   : > { %v349_v60 = vadd.f32 %v347_v40, %v298_v30  ;;  %v436_v30 = vld [vmem:[#allocation5 + $0x28] sm:$0xf0] }
  0xf5   : > { %v1907_v44 = vpop.permute.xlu1 %372  ;;  %v371_v46 = vpop.permute.xlu0 %370  ;;  %v366_v59 = vadd.f32 %v364_v41, %v315_v51  ;;  %v476_v41 = vld [vmem:[#allocation5 + $0x60] sm:$0xf0] }
  0xf6   : > { %v377_v25 = vsel %vm376_vm6, %v371_v46, %v1907_v44  ;;  %v348_v46 = vmul.f32 %v344_v22, %v335_v21  ;;  %v492_v51 = vld [vmem:[#allocation5 + $0x80] sm:$0xf0] }
  0xf7   : > { %867 = vrot.lane.b32.xlu1 %v1858_v24, %s1573_s10  ;;  %869 = vrot.lane.b32.xlu0 %v1868_v28, %s1573_s10  ;;  %v381_v47 = vmul.f32 %v377_v25, %v368_v23 }
  0xf8   : > { %v350_v61 = vadd.f32 %v348_v46, %v299_v31 }
  0xf9   : > { %v1913_v45 = vpop.permute.xlu1 %387  ;;  %v375_v53 = vpop.permute.xlu0 %374  ;;  %v383_v62 = vadd.f32 %v381_v47, %v332_v55  ;;  %v477_v47 = vld [vmem:[#allocation5 + $0x68] sm:$0xf0] }
  0xfa   : > { %v378_v36 = vsel %vm376_vm6, %v1907_v44, %v375_v53 }
  0xfb   : > { %871 = vrot.lane.b32.xlu1 %v1871_v29, %s1573_s10  ;;  %681 = vrot.lane.b32.xlu0 %v1825_v17, %s1572_s9  ;;  %v382_v53 = vmul.f32 %v378_v36, %v369_v35  ;;  %v1305_v35 = vld [vmem:[%s1745_s13 + $0x1] ss:$4 sm:$0x3] }
  0xfc   : > { %v428_v36 = vrot.slane %v1305_v35, %v1759_v5 }
  0xfd   : > { %v1920_v48 = vpop.permute.xlu1 %391  ;;  %v390_v27 = vpop.permute.xlu0 %389  ;;  %v384_v0 = vadd.f32 %v382_v53, %v333_v56  ;;  %v524_v56 = vld [vmem:[#allocation5 + $0xc0] sm:$0xf0] }
  0xfe   : > { %v394_v50 = vsel %vm393_vm7, %v1913_v45, %v390_v27  ;;  %v395_v44 = vsel %vm393_vm7, %v390_v27, %v1920_v48  ;;  %v367_v48 = vadd.f32 %v365_v42, %v316_v52  ;;  %v432_v46 = vmul.f32 %v428_v36, %v419_v38  ;;  %v493_v52 = vld [vmem:[#allocation5 + $0x88] sm:$0xf0] }
  0xff   : > { %683 = vrot.lane.b32.xlu1 %v1828_v18, %s1572_s9  ;;  %685 = vrot.lane.b32.xlu0 %v1833_v19, %s1572_s9  ;;  %v398_v57 = vmul.f32 %v394_v50, %v385_v26  ;;  %v399_v58 = vmul.f32 %v395_v44, %v386_v49 }
 0x101   : > { %v1928_v54 = vpop.permute.xlu1 %450  ;;  %v400_v1 = vadd.f32 %v398_v57, %v349_v60  ;;  %v401_v2 = vadd.f32 %v399_v58, %v350_v61  ;;  %v525_v57 = vld [vmem:[#allocation5 + $0xc8] sm:$0xf0]  ;;  %v508_v61 = vld [vmem:[#allocation5 + $0xa0] sm:$0xf0] }
 0x103   : > { %713 = vrot.lane.b32.xlu1 %v1825_v17, %s1574_s14  ;;  %715 = vrot.lane.b32.xlu0 %v1828_v18, %s1574_s14 }
 0x105   : > { %v1941_v9 = vpop.permute.xlu1 %452 }
 0x107   : > { %717 = vrot.lane.b32.xlu1 %v1833_v19, %s1574_s14  ;;  %805 = vrot.lane.b32.xlu0 %v1858_v24, %s1569_s23 }
 0x109   : > { %v1963_v43 = vpop.permute.xlu1 %464 }
 0x10b   : > { %807 = vrot.lane.b32.xlu1 %v1868_v28, %s1569_s23  ;;  %809 = vrot.lane.b32.xlu0 %v1871_v29, %s1569_s23  ;;  %s1988_s23 = scalar_lea.vmem [#allocation8], %s1304_s21 }
 0x10c   : > { %s1181_s26 = sshll.u32 %s1988_s23, 4  ;;  %s2246_s26 = int_to_ptr.vmem [resolvable:$true] %s1181_s26 }
 0x10d   : > { %v1973_v45 = vpop.permute.xlu1 %468  ;;  %p1466_p10 = scmp.lt.s32.totalorder %s2246_s26, %s1464_s7 }
 0x10e   : > { %v406_v63 = vpop.permute.xlu0 %405 }
 0x10f   : > { %v408_v4 = vadd.f32 %v406_v63, %v366_v59  ;;  %v409_v6 = vadd.f32 %v406_v63, %v367_v48  ;;  %851 = vrot.lane.b32.xlu1 %v1858_v24, %s1572_s9  ;;  %853 = vrot.lane.b32.xlu0 %v1868_v28, %s1572_s9  ;;  %v509_v63 = vld [vmem:[#allocation5 + $0xa8] sm:$0xf0] }
 0x111   : > { %v410_v7 = vadd.f32 %v408_v4, %v383_v62  ;;  %v411_v8 = vadd.f32 %v409_v6, %v384_v0  ;;  %v481_v10 = vpop.permute.xlu1 %480  ;;  %v540_v6 = vld [vmem:[#allocation5 + $0xe0] sm:$0xf0] }
 0x112   : > { %v455_v11 = vpop.permute.xlu0 %454 }
 0x113   : > { %v1980_v12 = vadd.f32 %v410_v7, %v400_v1  ;;  %v1982_v13 = vadd.f32 %v411_v8, %v401_v2  ;;  %855 = vrot.lane.b32.xlu1 %v1871_v29, %s1572_s9  ;;  %883 = vrot.lane.b32.xlu0 %v1858_v24, %s1574_s14  ;;  %v457_v44 = vsel %vm278_vm0, %v1941_v9, %v455_v11  ;;  %v541_v2 = vld [vmem:[#allocation5 + $0xe8] sm:$0xf0] }
 0x115   : > { %414 = vst [vmem:[%s1988_s23] sm:$0xf] %v1980_v12  ;;  %415 = vst [vmem:[%s1988_s23 + $0x8] sm:$0xf] %v1982_v13  ;;  %v495_v14 = vpop.permute.xlu1 %494 }
 0x116   : > { %v467_v15 = vpop.permute.xlu0 %466 }
 0x117   : > { %885 = vrot.lane.b32.xlu1 %v1868_v28, %s1574_s14  ;;  %887 = vrot.lane.b32.xlu0 %v1871_v29, %s1574_s14  ;;  %v470_v31 = vsel %vm293_vm3, %v1963_v43, %v467_v15  ;;  %v471_v55 = vsel %vm293_vm3, %v467_v15, %v1973_v45  ;;  %v556_v15 = vld [vmem:[#allocation5 + $0x100] sm:$0xf0]  ;;  %s1154_s14 = scalar_lea.sflag [#allocation9], %s1741_s8 }
 0x119   : > { %v499_v16 = vpop.permute.xlu1 %498 }
 0x11a   : > { %v479_v20 = vpop.permute.xlu0 %478 }
 0x11b   : > { %729 = vrot.lane.b32.xlu1 %v1825_v17, %s1575_s20  ;;  %731 = vrot.lane.b32.xlu0 %v1828_v18, %s1575_s20  ;;  %v484_v42 = vsel %vm308_vm1, %v479_v20, %v481_v10 }
 0x11c   : > { %v488_v48 = vmul.f32 %v484_v42, %v476_v41 }
 0x11d   : > { %v513_v21 = vpop.permute.xlu1 %512 }
 0x11e   : > { %v483_v22 = vpop.permute.xlu0 %482 }
 0x11f   : > { %733 = vrot.lane.b32.xlu1 %v1833_v19, %s1575_s20  ;;  %899 = vrot.lane.b32.xlu0 %v1858_v24, %s1575_s20  ;;  %v424_v19 = vrot.slane %v1305_v35, %v1755_v3  ;;  %v485_v26 = vsel %vm308_vm1, %v481_v10, %v483_v22  ;;  %v463_v10 = vld [vmem:[#allocation5 + $0x48] sm:$0xf0] }
 0x120   : > { %v489_v60 = vmul.f32 %v485_v26, %v477_v47 }
 0x121   : > { %v527_v23 = vpop.permute.xlu1 %526  ;;  %v431_v40 = vmul.f32 %v424_v19, %v418_v37  ;;  %v475_v19 = vmul.f32 %v471_v55, %v463_v10  ;;  %v589_v10 = vld [vmem:[#allocation5 + $0x10] sm:$0xf] }
 0x122   : > { %v497_v25 = vpop.permute.xlu0 %496 }
 0x123   : > { %901 = vrot.lane.b32.xlu1 %v1868_v28, %s1575_s20  ;;  %903 = vrot.lane.b32.xlu0 %v1871_v29, %s1575_s20  ;;  %v456_v28 = vsel %vm278_vm0, %v1928_v54, %v1941_v9  ;;  %v500_v53 = vsel %vm325_vm2, %v495_v14, %v497_v25  ;;  %v501_v54 = vsel %vm325_vm2, %v497_v25, %v499_v16  ;;  %v462_v9 = vld [vmem:[#allocation5 + $0x40] sm:$0xf0]  ;;  %v557_v16 = vld [vmem:[#allocation5 + $0x108] sm:$0xf0]  ;;  %s1459_s20 = scalar_lea.vmem %s2246_s26, 512 }
 0x124   : > { %v460_v50 = vmul.f32 %v456_v28, %v435_v39  ;;  %v504_v4 = vmul.f32 %v500_v53, %v492_v51  ;;  %v505_v43 = vmul.f32 %v501_v54, %v493_v52  ;;  %p1460_p4 = scmp.ne.s32.totalorder %s2246_s26, %s1459_s20  ;;  %p1467_p11 = scmp.lt.s32.totalorder %s1465_s25, %s1459_s20 }
 0x125   : > { %v531_v17 = vpop.permute.xlu1 %530 }
 0x126   : > { %v511_v27 = vpop.permute.xlu0 %510  ;;  %p1461_p6 = pnand %p1460_p4, %p1696_p12  ;;  %p1468_p3 = por %p1467_p11, %p1466_p10 }
 0x127   : > { %v516_v62 = vsel %vm342_vm4, %v511_v27, %v513_v21  ;;  %v490_v27 = vadd.f32 %v488_v48, %v431_v40 }
 0x128   : > { %v520_v25 = vmul.f32 %v516_v62, %v508_v61  ;;  %p1462_p8 = pneg %p1461_p6 }
 0x129   : > { %v545_v32 = vpop.permute.xlu1 %544 }
 0x12a   : > { %v515_v18 = vpop.permute.xlu0 %514  ;;  %p1469_p7 = pnand %p1468_p3, %p1462_p8 }
 0x12b   : > { %v517_v0 = vsel %vm342_vm4, %v513_v21, %v515_v18  ;;  %v461_v21 = vmul.f32 %v457_v44, %v436_v30  ;;  %v491_v18 = vadd.f32 %v489_v60, %v432_v46 }
 0x12d   : > { %v559_v33 = vpop.permute.xlu1 %558  ;;  %v507_v38 = vadd.f32 %v505_v43, %v461_v21 }
 0x12e   : > { %v529_v34 = vpop.permute.xlu0 %528 }
 0x12f   : > { %v532_v58 = vsel %vm359_vm5, %v527_v23, %v529_v34  ;;  %v533_v59 = vsel %vm359_vm5, %v529_v34, %v531_v17  ;;  %v474_v23 = vmul.f32 %v470_v31, %v462_v9  ;;  %v521_v17 = vmul.f32 %v517_v0, %v509_v63 }
 0x130   : > { %v536_v11 = vmul.f32 %v532_v58, %v524_v56  ;;  %v537_v14 = vmul.f32 %v533_v59, %v525_v57 }
 0x131   : > { %v563_v29 = vpop.permute.xlu1 %562  ;;  %v523_v42 = vadd.f32 %v521_v17, %v475_v19 }
 0x132   : > { %v543_v24 = vpop.permute.xlu0 %542  ;;  %v538_v39 = vadd.f32 %v536_v11, %v490_v27  ;;  %v539_v28 = vadd.f32 %v537_v14, %v491_v18  ;;  %v695_v18 = vld [vmem:[#allocation5 + $0xd0] sm:$0xf] }
 0x133   : > { %v548_v45 = vsel %vm376_vm6, %v543_v24, %v545_v32 }
 0x134   : > { %v552_v34 = vmul.f32 %v548_v45, %v540_v6 }
 0x135   : > { %v622_v1 = vpop.permute.xlu1 %621 }
 0x136   : > { %v547_v49 = vpop.permute.xlu0 %546 }
 0x137   : > { %v549_v7 = vsel %vm376_vm6, %v545_v32, %v547_v49  ;;  %v506_v32 = vadd.f32 %v504_v4, %v460_v50 }
 0x138   : > { %v553_v35 = vmul.f32 %v549_v7, %v541_v2  ;;  %v1307_v2 = vld [vmem:[%s1745_s13 + $0x2] ss:$4 sm:$0x3] }
 0x139   : > { %v554_v47 = vadd.f32 %v552_v34, %v506_v32  ;;  %v595_v11 = vrot.slane %v1307_v2, %v1755_v3  ;;  %v599_v14 = vrot.slane %v1307_v2, %v1759_v5  ;;  %v696_v34 = vld [vmem:[#allocation5 + $0xd8] sm:$0xf]  ;;  %v866_v2 = vld [vmem:[#allocation5 + $0xd8] sm:$0xf0] }
 0x13a   : > { %v561_v8 = vpop.permute.xlu0 %560  ;;  %v555_v26 = vadd.f32 %v553_v35, %v507_v38 }
 0x13b   : > { %v564_v20 = vsel %vm393_vm7, %v559_v33, %v561_v8  ;;  %v565_v22 = vsel %vm393_vm7, %v561_v8, %v563_v29  ;;  %v522_v33 = vadd.f32 %v520_v25, %v474_v23  ;;  %v626_v29 = vpop.permute.xlu1 %625  ;;  %v602_v23 = vmul.f32 %v595_v11, %v589_v10 }
 0x13c   : > { %v568_v36 = vmul.f32 %v564_v20, %v556_v15  ;;  %v569_v24 = vmul.f32 %v565_v22, %v557_v16  ;;  %v647_v15 = vld [vmem:[#allocation5 + $0x70] sm:$0xf]  ;;  %v590_v16 = vld [vmem:[#allocation5 + $0x18] sm:$0xf] }
 0x13d   : > { %v648_v20 = vld [vmem:[#allocation5 + $0x78] sm:$0xf]  ;;  %v603_v17 = vmul.f32 %v599_v14, %v590_v16 }
 0x13e   : > { %v576_v37 = vpop.permute.xlu0 %575  ;;  %v570_v49 = vadd.f32 %v568_v36, %v522_v33  ;;  %v571_v44 = vadd.f32 %v569_v24, %v523_v42 }
 0x13f   : > { %v577_v41 = vrot.slane %v576_v37, 4  ;;  %v638_v55 = vpop.permute.xlu1 %637 }
 0x141   : > { %v579_v40 = vadd.f32 %v577_v41, %v538_v39  ;;  %v580_v46 = vadd.f32 %v577_v41, %v539_v28 }
 0x142   : > { %v624_v51 = vpop.permute.xlu0 %623 }
 0x143   : > { %v581_v50 = vadd.f32 %v579_v40, %v554_v47  ;;  %v582_v52 = vadd.f32 %v580_v46, %v555_v26  ;;  %v2035_v53 = vsel %vm278_vm0, %v622_v1, %v624_v51  ;;  %v2038_v54 = vsel %vm278_vm0, %v624_v51, %v626_v29  ;;  %v1309_v26 = vld [vmem:[%s1745_s13 + $0x3] ss:$4 sm:$0x3]  ;;  %s1320_s13 = sshll.u32 %s1626_s19, 9 }
 0x144   : > { %v817_v51 = vld [vmem:[#allocation5 + $0x70] sm:$0xf0]  ;;  %s2244_s10 = scalar_lea.hbm %s2397_s4, %s1320_s13 }
 0x145   : > { %v2040_v30 = vadd.f32 %v581_v50, %v570_v49  ;;  %v2042_v31 = vadd.f32 %v582_v52, %v571_v44  ;;  %v765_v49 = vrot.slane %v1309_v26, %v1755_v3  ;;  %v759_v44 = vld [vmem:[#allocation5 + $0x10] sm:$0xf0] }
 0x146   : > { %v636_v56 = vpop.permute.xlu0 %635 }
 0x147   : > { %585 = vst [vmem:[%s1988_s23] sm:$0xf0] %v2040_v30  ;;  %586 = vst [vmem:[%s1988_s23 + $0x8] sm:$0xf0] %v2042_v31  ;;  %v2049_v57 = vsel %vm293_vm3, %v636_v56, %v638_v55 }
 0x14a   : > { %v640_v58 = vpop.permute.xlu0 %639 }
 0x14b   : > { %v2052_v59 = vsel %vm293_vm3, %v638_v55, %v640_v58  ;;  %v772_v55 = vmul.f32 %v765_v49, %v759_v44  ;;  %v769_v58 = vrot.slane %v1309_v26, %v1759_v5 }
 0x14e   : > { %v2054_v9 = vpop.permute.xlu1 %916  ;;  %v650_v48 = vpop.permute.xlu0 %649 }
 0x14f   : > { %v918_v10 = vrot.slane %v2054_v9, 4 }
 0x152   : > { %v652_v60 = vpop.permute.xlu1 %651  ;;  %v654_v61 = vpop.permute.xlu0 %653 }
 0x153   : > { %v655_v62 = vsel %vm308_vm1, %v650_v48, %v652_v60  ;;  %v656_v63 = vsel %vm308_vm1, %v652_v60, %v654_v61  ;;  %v760_v48 = vld [vmem:[#allocation5 + $0x18] sm:$0xf0]  ;;  %v865_v61 = vld [vmem:[#allocation5 + $0xd0] sm:$0xf0] }
 0x154   : > { %v659_v25 = vmul.f32 %v655_v62, %v647_v15  ;;  %v660_v27 = vmul.f32 %v656_v63, %v648_v20  ;;  %v818_v60 = vld [vmem:[#allocation5 + $0x78] sm:$0xf0] }
 0x156   : > { %v747_v0 = vpop.permute.xlu1 %746  ;;  %v820_v4 = vpop.permute.xlu0 %819  ;;  %v661_v24 = vadd.f32 %v659_v25, %v602_v23  ;;  %v662_v37 = vadd.f32 %v660_v27, %v603_v17  ;;  %v606_v27 = vld [vmem:[#allocation5 + $0x30] sm:$0xf] }
 0x15a   : > { %v822_v43 = vpop.permute.xlu1 %821  ;;  %v824_v6 = vpop.permute.xlu0 %823 }
 0x15b   : > { %v825_v45 = vsel %vm308_vm1, %v820_v4, %v822_v43  ;;  %v826_v1 = vsel %vm308_vm1, %v822_v43, %v824_v6  ;;  %v773_v43 = vmul.f32 %v769_v58, %v760_v48 }
 0x15c   : > { %v829_v56 = vmul.f32 %v825_v45, %v817_v51  ;;  %v830_v3 = vmul.f32 %v826_v1, %v818_v60 }
 0x15e   : > { %v666_v7 = vpop.permute.xlu1 %665  ;;  %v2061_v8 = vpop.permute.xlu0 %667  ;;  %v831_v4 = vadd.f32 %v829_v56, %v772_v55  ;;  %v832_v5 = vadd.f32 %v830_v3, %v773_v43  ;;  %v1033_v43 = vrot.slane %v1982_v13, 2  ;;  %v1047_v3 = vrot.slane %v1982_v13, 6 }
 0x15f   : > { %v671_v23 = vsel %vm325_vm2, %v666_v7, %v2061_v8 }
 0x162   : > { %v670_v22 = vpop.permute.xlu1 %669  ;;  %v698_v21 = vpop.permute.xlu0 %697 }
 0x166   : > { %v700_v35 = vpop.permute.xlu1 %699  ;;  %v702_v19 = vpop.permute.xlu0 %701 }
 0x167   : > { %v703_v32 = vsel %vm359_vm5, %v698_v21, %v700_v35  ;;  %v704_v36 = vsel %vm359_vm5, %v700_v35, %v702_v19  ;;  %v663_v21 = vld [vmem:[#allocation5 + $0x90] sm:$0xf]  ;;  %v672_v35 = vsel %vm325_vm2, %v2061_v8, %v670_v22 }
 0x168   : > { %v707_v38 = vmul.f32 %v703_v32, %v695_v18  ;;  %v708_v39 = vmul.f32 %v704_v36, %v696_v34  ;;  %v675_v9 = vmul.f32 %v671_v23, %v663_v21  ;;  %v664_v34 = vld [vmem:[#allocation5 + $0x98] sm:$0xf]  ;;  %v711_v19 = vld [vmem:[#allocation5 + $0xf0] sm:$0xf]  ;;  %v631_v32 = vmul.f32 %v2035_v53, %v606_v27  ;;  %v776_v21 = vld [vmem:[#allocation5 + $0x30] sm:$0xf0] }
 0x169   : > { %v679_v23 = vld [vmem:[#allocation5 + $0xb0] sm:$0xf]  ;;  %v2132_v27 = vmax.f32 %v2042_v31, %v1033_v43 }
 0x16a   : > { %v709_v28 = vadd.f32 %v707_v38, %v661_v24  ;;  %v710_v41 = vadd.f32 %v708_v39, %v662_v37  ;;  %v2067_v33 = vpop.permute.xlu1 %791  ;;  %v2069_v42 = vpop.permute.xlu0 %793  ;;  %v607_v37 = vld [vmem:[#allocation5 + $0x38] sm:$0xf]  ;;  %v677_v38 = vadd.f32 %v675_v9, %v631_v32  ;;  %v676_v39 = vmul.f32 %v672_v35, %v664_v34  ;;  %v881_v35 = vld [vmem:[#allocation5 + $0xf0] sm:$0xf0]  ;;  %v882_v32 = vld [vmem:[#allocation5 + $0xf8] sm:$0xf0] }
 0x16b   : > { %v632_v26 = vmul.f32 %v2038_v54, %v607_v37  ;;  %v633_v54 = vld [vmem:[#allocation5 + $0x50] sm:$0xf]  ;;  %v1039_v9 = vrot.slane %v2042_v31, 7 }
 0x16c   : > { %v749_v29 = vadd.f32 %v747_v0, %v709_v28  ;;  %v750_v47 = vadd.f32 %v747_v0, %v710_v41  ;;  %v712_v41 = vld [vmem:[#allocation5 + $0xf8] sm:$0xf] }
 0x16d   : > { %v678_v22 = vadd.f32 %v676_v39, %v632_v26 }
 0x16e   : > { %v2072_v40 = vpop.permute.xlu1 %795  ;;  %v2074_v46 = vpop.permute.xlu0 %835 }
 0x16f   : > { %v798_v34 = vsel %vm278_vm0, %v2069_v42, %v2072_v40 }
 0x172   : > { %v2077_v50 = vpop.permute.xlu1 %837  ;;  %v2079_v52 = vpop.permute.xlu0 %839 }
 0x176   : > { %v868_v62 = vpop.permute.xlu1 %867  ;;  %v870_v63 = vpop.permute.xlu0 %869 }
 0x177   : > { %v873_v0 = vsel %vm359_vm5, %v868_v62, %v870_v63 }
 0x178   : > { %v877_v6 = vmul.f32 %v873_v0, %v865_v61 }
 0x17a   : > { %v879_v11 = vadd.f32 %v877_v6, %v831_v4  ;;  %v872_v14 = vpop.permute.xlu1 %871  ;;  %v682_v15 = vpop.permute.xlu0 %681  ;;  %v1032_v4 = vrot.slane %v1980_v12, 2  ;;  %v645_v6 = vmul.f32 %v2049_v57, %v633_v54  ;;  %v850_v54 = vld [vmem:[#allocation5 + $0xb8] sm:$0xf0] }
 0x17b   : > { %v874_v45 = vsel %vm359_vm5, %v870_v63, %v872_v14  ;;  %v841_v14 = vsel %vm325_vm2, %v2074_v46, %v2077_v50  ;;  %v1038_v46 = vrot.slane %v2040_v30, 7 }
 0x17c   : > { %v2085_v16 = vadd.f32 %v918_v10, %v879_v11  ;;  %v878_v20 = vmul.f32 %v874_v45, %v866_v2  ;;  %v930_v2 = vrot.slane %v2040_v30, 3  ;;  %v833_v11 = vld [vmem:[#allocation5 + $0x90] sm:$0xf0]  ;;  %v834_v45 = vld [vmem:[#allocation5 + $0x98] sm:$0xf0]  ;;  %v2127_v57 = vmax.f32 %v2040_v30, %v1032_v4 }
 0x17e   : > { %v880_v25 = vadd.f32 %v878_v20, %v832_v5  ;;  %v2089_v17 = vpop.permute.xlu1 %683  ;;  %v2091_v1 = vpop.permute.xlu0 %685  ;;  %v842_v5 = vsel %vm325_vm2, %v2077_v50, %v2079_v52  ;;  %v987_v20 = vrot.slane %v2042_v31, 5  ;;  %v797_v50 = vsel %vm278_vm0, %v2067_v33, %v2069_v42  ;;  %v777_v52 = vld [vmem:[#allocation5 + $0x38] sm:$0xf0] }
 0x17f   : > { %v845_v33 = vmul.f32 %v841_v14, %v833_v11  ;;  %v846_v37 = vmul.f32 %v842_v5, %v834_v45  ;;  %v688_v39 = vsel %vm342_vm4, %v2089_v17, %v2091_v1  ;;  %v801_v26 = vmul.f32 %v797_v50, %v776_v21  ;;  %v634_v11 = vld [vmem:[#allocation5 + $0x58] sm:$0xf] }
 0x180   : > { %v2093_v18 = vadd.f32 %v918_v10, %v880_v25  ;;  %v986_v10 = vrot.slane %v2040_v30, 5  ;;  %v687_v25 = vsel %vm342_vm4, %v682_v15, %v2089_v17  ;;  %v2169_v1 = vmax.f32 %v1982_v13, %v987_v20 }
 0x181   : > { %v691_v40 = vmul.f32 %v687_v25, %v679_v23  ;;  %v847_v14 = vadd.f32 %v845_v33, %v801_v26  ;;  %v804_v23 = vld [vmem:[#allocation5 + $0x58] sm:$0xf0] }
 0x182   : > { %v714_v36 = vpop.permute.xlu1 %713  ;;  %v716_v24 = vpop.permute.xlu0 %715  ;;  %v2164_v17 = vmax.f32 %v1980_v12, %v986_v10 }
 0x183   : > { %v719_v7 = vsel %vm376_vm6, %v714_v36, %v716_v24  ;;  %v693_v21 = vadd.f32 %v691_v40, %v645_v6 }
 0x184   : > { %v723_v28 = vmul.f32 %v719_v7, %v711_v19 }
 0x186   : > { %v725_v49 = vadd.f32 %v723_v28, %v677_v38  ;;  %v718_v44 = vpop.permute.xlu1 %717  ;;  %v2100_v51 = vpop.permute.xlu0 %805  ;;  %v680_v38 = vld [vmem:[#allocation5 + $0xb8] sm:$0xf]  ;;  %v1072_v28 = vrot.slane %v2040_v30, 6 }
 0x187   : > { %v720_v8 = vsel %vm376_vm6, %v716_v24, %v718_v44  ;;  %v2150_v24 = vmax.f32 %v2042_v31, %v1047_v3  ;;  %v692_v5 = vmul.f32 %v688_v39, %v680_v38 }
 0x188   : > { %v2103_v55 = vadd.f32 %v749_v29, %v725_v49  ;;  %v724_v53 = vmul.f32 %v720_v8, %v712_v41  ;;  %v1046_v29 = vrot.slane %v1980_v12, 6  ;;  %v1073_v41 = vrot.slane %v2042_v31, 6 }
 0x189   : > { %v802_v49 = vmul.f32 %v798_v34, %v777_v52 }
 0x18a   : > { %v726_v56 = vadd.f32 %v724_v53, %v678_v22  ;;  %v2105_v58 = vpop.permute.xlu1 %807  ;;  %v2107_v48 = vpop.permute.xlu0 %809  ;;  %v2145_v36 = vmax.f32 %v2040_v30, %v1046_v29  ;;  %v727_v22 = vld [vmem:[#allocation5 + $0x110] sm:$0xf]  ;;  %v849_v53 = vld [vmem:[#allocation5 + $0xb0] sm:$0xf0] }
 0x18b   : > { %v848_v45 = vadd.f32 %v846_v37, %v802_v49  ;;  %v812_v25 = vsel %vm293_vm3, %v2105_v58, %v2107_v48  ;;  %v1088_v48 = vrot.slane %v2164_v17, 7 }
 0x18c   : > { %v2109_v60 = vadd.f32 %v750_v47, %v726_v56  ;;  %v931_v47 = vrot.slane %v2042_v31, 3  ;;  %v816_v40 = vmul.f32 %v812_v25, %v804_v23 }
 0x18e   : > { %v852_v61 = vpop.permute.xlu1 %851  ;;  %v854_v62 = vpop.permute.xlu0 %853 }
 0x18f   : > { %v857_v56 = vsel %vm342_vm4, %v852_v61, %v854_v62 }
 0x190   : > { %v861_v52 = vmul.f32 %v857_v56, %v849_v53  ;;  %v897_v53 = vld [vmem:[#allocation5 + $0x110] sm:$0xf0]  ;;  %v898_v56 = vld [vmem:[#allocation5 + $0x118] sm:$0xf0] }
 0x192   : > { %v856_v63 = vpop.permute.xlu1 %855  ;;  %v884_v0 = vpop.permute.xlu0 %883 }
 0x196   : > { %v886_v19 = vpop.permute.xlu1 %885  ;;  %v888_v15 = vpop.permute.xlu0 %887 }
 0x197   : > { %v889_v7 = vsel %vm376_vm6, %v884_v0, %v886_v19  ;;  %v890_v42 = vsel %vm376_vm6, %v886_v19, %v888_v15  ;;  %v858_v0 = vsel %vm342_vm4, %v854_v62, %v856_v63  ;;  %v803_v62 = vld [vmem:[#allocation5 + $0x50] sm:$0xf0]  ;;  %v811_v63 = vsel %vm293_vm3, %v2100_v51, %v2105_v58 }
 0x198   : > { %v893_v44 = vmul.f32 %v889_v7, %v881_v35  ;;  %v894_v8 = vmul.f32 %v890_v42, %v882_v32  ;;  %v862_v34 = vmul.f32 %v858_v0, %v850_v54  ;;  %v728_v32 = vld [vmem:[#allocation5 + $0x118] sm:$0xf]  ;;  %v646_v15 = vmul.f32 %v2052_v59, %v634_v11 }
 0x199   : > { %v1054_v7 = vrot.slane %v2145_v36, 5  ;;  %v1055_v51 = vrot.slane %v2150_v24, 5  ;;  %v815_v42 = vmul.f32 %v811_v63, %v803_v62  ;;  %v1089_v59 = vrot.slane %v2169_v1, 7 }
 0x19a   : > { %v730_v4 = vpop.permute.xlu1 %729  ;;  %v732_v43 = vpop.permute.xlu0 %731  ;;  %v895_v35 = vadd.f32 %v893_v44, %v847_v14  ;;  %v896_v19 = vadd.f32 %v894_v8, %v848_v45  ;;  %v694_v38 = vadd.f32 %v692_v5, %v646_v15  ;;  %v864_v44 = vadd.f32 %v862_v34, %v816_v40 }
 0x19b   : > { %v735_v61 = vsel %vm393_vm7, %v730_v4, %v732_v43  ;;  %v863_v49 = vadd.f32 %v861_v52, %v815_v42 }
 0x19c   : > { %v739_v50 = vmul.f32 %v735_v61, %v727_v22  ;;  %v922_v8 = vadd.f32 %v2085_v16, %v895_v35  ;;  %v923_v22 = vadd.f32 %v2093_v18, %v896_v19 }
 0x19e   : > { %v741_v33 = vadd.f32 %v739_v50, %v693_v21  ;;  %v734_v6 = vpop.permute.xlu1 %733  ;;  %v900_v37 = vpop.permute.xlu0 %899 }
 0x19f   : > { %v736_v58 = vsel %vm393_vm7, %v732_v43, %v734_v6 }
 0x1a0   : > { %v2184_v39 = vadd.f32 %v2103_v55, %v741_v33  ;;  %v740_v26 = vmul.f32 %v736_v58, %v728_v32 }
 0x1a2   : > { %755 = vst [vmem:[%s1988_s23 + $0x10] sm:$0xf] %v2184_v39  ;;  %v742_v54 = vadd.f32 %v740_v26, %v694_v38  ;;  %v902_v0 = vpop.permute.xlu1 %901  ;;  %v904_v4 = vpop.permute.xlu0 %903  ;;  %v934_v55 = vmax.f32 %v2184_v39, %v930_v2  ;;  %v2196_v43 = vmax.f32 %v2184_v39, %v1980_v12  ;;  %v964_v16 = vrot.slane %v2184_v39, 6 }
 0x1a3   : > { %v905_v18 = vsel %vm393_vm7, %v900_v37, %v902_v0  ;;  %v906_v11 = vsel %vm393_vm7, %v902_v0, %v904_v4  ;;  %v2204_v14 = vmax.f32 %v2184_v39, %v986_v10  ;;  %v1000_v45 = vrot.slane %v2184_v39, 7 }
 0x1a4   : > { %v2208_v2 = vadd.f32 %v2109_v60, %v742_v54  ;;  %v909_v5 = vmul.f32 %v905_v18, %v897_v53  ;;  %v910_v61 = vmul.f32 %v906_v11, %v898_v56  ;;  %v940_v21 = vrot.slane %v2196_v43, 7 }
 0x1a5   : > { %v994_v62 = vrot.slane %v2204_v14, 4  ;;  %v2215_v63 = vmax.f32 %v1980_v12, %v1000_v45  ;;  %v1014_v23 = vrot.slane %v2184_v39, 3  ;;  %v2221_v10 = vmax.f32 %v2184_v39, %v1072_v28 }
 0x1a6   : > { %756 = vst [vmem:[%s1988_s23 + $0x18] sm:$0xf] %v2208_v2  ;;  %v911_v60 = vadd.f32 %v909_v5, %v863_v49  ;;  %v912_v25 = vadd.f32 %v910_v61, %v864_v44  ;;  %v935_v50 = vmax.f32 %v2208_v2, %v931_v47  ;;  %v2230_v52 = vmax.f32 %v2208_v2, %v1982_v13 }
 0x1a7   : > { %v2232_v34 = vadd.f32 %v940_v21, %v934_v55  ;;  %v965_v35 = vrot.slane %v2208_v2, 6  ;;  %v2238_v28 = vmax.f32 %v2208_v2, %v987_v20  ;;  %v1001_v19 = vrot.slane %v2208_v2, 7 }
 0x1a8   : > { %v2248_v47 = vadd.f32 %v922_v8, %v911_v60  ;;  %v2250_v32 = vadd.f32 %v923_v22, %v912_v25  ;;  %v941_v15 = vrot.slane %v2230_v52, 7  ;;  %v1008_v33 = vrot.slane %v2215_v63, 5 }
 0x1a9   : > { %v995_v20 = vrot.slane %v2238_v28, 4  ;;  %v2256_v6 = vmax.f32 %v1982_v13, %v1001_v19  ;;  %v1015_v37 = vrot.slane %v2208_v2, 3  ;;  %v2262_v42 = vmax.f32 %v2208_v2, %v1073_v41 }
 0x1aa   : > { %926 = vst [vmem:[%s1988_s23 + $0x10] sm:$0xf0] %v2248_v47  ;;  %927 = vst [vmem:[%s1988_s23 + $0x18] sm:$0xf0] %v2250_v32  ;;  %v945_v40 = vadd.f32 %v941_v15, %v935_v50  ;;  %v948_v58 = vrot.slane %v2248_v47, 6  ;;  %v949_v38 = vrot.slane %v2250_v32, 6  ;;  %v968_v26 = vmax.f32 %v2248_v47, %v964_v16 }
 0x1ab   : > { %v969_v49 = vmax.f32 %v2250_v32, %v965_v35  ;;  %v980_v44 = vrot.slane %v2248_v47, 1  ;;  %v981_v8 = vrot.slane %v2250_v32, 1  ;;  %v1009_v41 = vrot.slane %v2256_v6, 5 }
 0x1ac   : > { %1472 = shalt.err (!%p1469_p7)
}
 0x1ad   : > { %s1473_s29 = scalar_lea.hbm %s2244_s10, 512  ;;  %s1477_s6 = scalar_lea.hbm %s2397_s4, 1024 }
 0x1ae   : > { %p1474_p9 = scmp.ne.s32.totalorder %s2244_s10, %s1473_s29  ;;  %p1478_p0 = scmp.lt.u32.totalorder %s2244_s10, %s2397_s4 }
 0x1af   : > { %p1479_p13 = scmp.lt.u32.totalorder %s1477_s6, %s1473_s29  ;;  %p1481_p4 = scmp.lt.u32.totalorder %s1473_s29, %s2244_s10 }
 0x1b0   : > { %p1475_p2 = pnand %p1474_p9, %p1696_p12 }
 0x1b1   : > { %p1480_p1 = por %p1479_p13, %p1478_p0 }
 0x1b2   : > { %p1476_p5 = pneg %p1475_p2 }
 0x1b3   : > { %p1482_p6 = por %p1481_p4, %p1480_p1 }
 0x1b5   : > { %p1483_p8 = pnand %p1482_p6, %p1476_p5 }
 0x1b7   : > { %1486 = shalt.err (!%p1483_p8)
}
 0x1b8   : > { %s1577_s13 = smov 256   ;;  %s1578_s28 = smov 16   ;;  %v952_v22 = vmax.f32 %v1980_v12, %v948_v58  ;;  %v953_v53 = vmax.f32 %v1982_v13, %v949_v38  ;;  %v972_v56 = vrot.slane %v968_v26, 1  ;;  %v1018_v54 = vmax.f32 %v2248_v47, %v1014_v23 }
 0x1b9   : > { %1331 = dma.vmem_to_hbm [thread:$0]  (%p1696_p12), %s2246_s26, 512, %s2244_s10, %s1154_s14, %s1577_s13, %s1577_s13, %s1578_s28   ;;  %v973_v0 = vrot.slane %v969_v49, 1  ;;  %v984_v4 = vmax.f32 %v2040_v30, %v980_v44  ;;  %v985_v55 = vmax.f32 %v2042_v31, %v981_v8  ;;  %v1019_v16 = vmax.f32 %v2250_v32, %v1015_v37 }
 0x1ba   : > { %v956_v18 = vrot.slane %v952_v22, 5  ;;  %v957_v11 = vrot.slane %v953_v53, 5  ;;  %v1022_v45 = vrot.slane %v1018_v54, 2  ;;  %v1042_v2 = vmax.f32 %v2248_v47, %v1038_v46  ;;  %s1303_s26 = sshll.u32 %s1741_s8, 3  ;;  %s1319_s9 = sshll.u32 %s1626_s19, 7 }
 0x1bb   : > { %v998_v5 = vadd.f32 %v994_v62, %v984_v4  ;;  %v999_v39 = vadd.f32 %v995_v20, %v985_v55  ;;  %v1023_v61 = vrot.slane %v1019_v16, 2  ;;  %v1043_v21 = vmax.f32 %v2250_v32, %v1039_v9  ;;  %s232_s10 = scalar_lea.vmem [#allocation7], %s1303_s26  ;;  %s2349_s7 = scalar_lea.hbm %s2396_s3, %s1319_s9 }
 0x1bc   : > { %vm1134_vm8 = vcmask 1040384   ;;  %v960_v23 = vadd.f32 %v956_v18, %v2232_v34  ;;  %v961_v60 = vadd.f32 %v957_v11, %v945_v40  ;;  %v1044_v25 = vadd.f32 %v1042_v2, %v2127_v57  ;;  %s1168_s14 = sshll.u32 %s232_s10, 4  ;;  %s1149_s25 = scalar_lea.sflag [#allocation4], %s1741_s8  ;;  %s2351_s14 = int_to_ptr.vmem [resolvable:$true] %s1168_s14 }
 0x1bd   : > { %v1060_v30 = vmax.f32 %v2248_v47, %v1046_v29  ;;  %v1012_v46 = vadd.f32 %v1008_v33, %v998_v5  ;;  %v1013_v14 = vadd.f32 %v1009_v41, %v999_v39  ;;  %v1045_v62 = vadd.f32 %v1043_v21, %v2132_v27  ;;  %s1487_s29 = scalar_lea.vmem %s2351_s14, 128  ;;  %s1579_s19 = smov [#allocation7]  }
 0x1be   : > { %v1061_v31 = vmax.f32 %v2250_v32, %v1047_v3  ;;  %v976_v9 = vadd.f32 %v972_v56, %v960_v23  ;;  %v977_v50 = vadd.f32 %v973_v0, %v961_v60  ;;  %v1058_v34 = vadd.f32 %v1054_v7, %v1044_v25  ;;  %p1488_p10 = scmp.ne.s32.totalorder %s2351_s14, %s1487_s29  ;;  %s1491_s11 = sshll.u32 %s1579_s19, 4  ;;  %s1492_s11 = int_to_ptr.vmem [resolvable:$false] %s1491_s11 }
 0x1bf   : > { %v1064_v57 = vrot.slane %v1060_v30, 6  ;;  %v1026_v35 = vadd.f32 %v1022_v45, %v1012_v46  ;;  %v1027_v12 = vadd.f32 %v1023_v61, %v1013_v14  ;;  %v1059_v29 = vadd.f32 %v1055_v51, %v1045_v62  ;;  %s1493_s12 = scalar_lea.vmem %s1492_s11, 256  ;;  %p1494_p7 = scmp.lt.s32.totalorder %s2351_s14, %s1492_s11 }
 0x1c0   : > { %v1065_v63 = vrot.slane %v1061_v31, 6  ;;  %v978_v28 = vmul.f32 0.25, %v976_v9  ;;  %v979_v19 = vmul.f32 0.25, %v977_v50  ;;  %v1078_v27 = vrot.slane %v2196_v43, 2  ;;  %p1489_p11 = pnand %p1488_p10, %p1696_p12  ;;  %p1495_p9 = scmp.lt.s32.totalorder %s1493_s12, %s1487_s29 }
 0x1c1   : > { %v1068_v15 = vadd.f32 %v1064_v57, %v1058_v34  ;;  %v1028_v13 = vmul.f32 0.25, %v1026_v35  ;;  %v1029_v33 = vmul.f32 0.25, %v1027_v12  ;;  %v1079_v20 = vrot.slane %v2230_v52, 2 }
 0x1c2   : > { %v1069_v3 = vadd.f32 %v1065_v63, %v1059_v29  ;;  %v1082_v36 = vadd.f32 %v1078_v27, %v2221_v10  ;;  %v1094_v7 = vrot.slane %v2248_v47, 5  ;;  %v1095_v24 = vrot.slane %v2250_v32, 5  ;;  %p1490_p3 = pneg %p1489_p11  ;;  %p1496_p2 = por %p1495_p9, %p1494_p7 }
 0x1c3   : > { %v1070_v6 = vmul.f32 0.25, %v1068_v15  ;;  %v1083_v37 = vadd.f32 %v1079_v20, %v2262_v42  ;;  %v1112_v40 = vrot.slane %v978_v28, 3  ;;  %v1113_v58 = vrot.slane %v979_v19, 3 }
 0x1c4   : > { %v1071_v51 = vmul.f32 0.25, %v1069_v3  ;;  %v1098_v43 = vmax.f32 %v2248_v47, %v1094_v7  ;;  %v1099_v38 = vmax.f32 %v2250_v32, %v1095_v24  ;;  %v1118_v26 = vrot.slane %v1028_v13, 3  ;;  %p1497_p5 = pnand %p1496_p2, %p1490_p3 }
 0x1c5   : > { %vm1137_vm9 = vcmask 1041408   ;;  %v1092_v52 = vadd.f32 %v1088_v48, %v1082_v36  ;;  %v1093_v10 = vadd.f32 %v1089_v59, %v1083_v37  ;;  %v1119_v49 = vrot.slane %v1029_v33, 3 }
 0x1c6   : > { %v1124_v44 = vrot.slane %v1070_v6, 5  ;;  %v1102_v8 = vrot.slane %v1098_v43, 6  ;;  %v1103_v42 = vrot.slane %v1099_v38, 6  ;;  %v1125_v41 = vrot.slane %v1071_v51, 5 }
 0x1c7   : > { %v1135_v22 = vsel %vm1134_vm8, %v1112_v40, %v1118_v26  ;;  %v1136_v47 = vsel %vm1134_vm8, %v1113_v58, %v1119_v49  ;;  %vm1140_vm10 = vcmask 1042432  }
 0x1c8   : > { %v1138_v32 = vsel %vm1137_vm9, %v1135_v22, %v1124_v44  ;;  %v1106_v53 = vadd.f32 %v1102_v8, %v1092_v52  ;;  %v1107_v56 = vadd.f32 %v1103_v42, %v1093_v10  ;;  %v1139_v17 = vsel %vm1137_vm9, %v1136_v47, %v1125_v41 }
 0x1ca   : > { %v1108_v48 = vmul.f32 0.25, %v1106_v53  ;;  %v1109_v54 = vmul.f32 0.25, %v1107_v56 }
 0x1cc   : > { %v1130_v1 = vrot.slane %v1108_v48, 6  ;;  %v1131_v59 = vrot.slane %v1109_v54, 6 }
 0x1ce   : > { %v1141_v0 = vsel %vm1140_vm10, %v1138_v32, %v1130_v1  ;;  %v1142_v4 = vsel %vm1140_vm10, %v1139_v17, %v1131_v59 }
 0x1cf   : > { %v1145_v55 = vcombine.low %v1141_v0, %v1142_v4 }
 0x1d1   : > { %1147 = vst [vmem:[%s232_s10] sm:$0xff] %v1145_v55 }
 0x1d2   : > { %1500 = shalt.err (!%p1497_p5)
}
 0x1d3   : > { %s1501_s8 = scalar_lea.hbm %s2349_s7, 128  ;;  %s1505_s23 = scalar_lea.hbm %s2396_s3, 256 }
 0x1d4   : > { %p1502_p0 = scmp.ne.s32.totalorder %s2349_s7, %s1501_s8  ;;  %p1506_p4 = scmp.lt.u32.totalorder %s2349_s7, %s2396_s3 }
 0x1d5   : > { %p1507_p6 = scmp.lt.u32.totalorder %s1505_s23, %s1501_s8  ;;  %p1509_p10 = scmp.lt.u32.totalorder %s1501_s8, %s2349_s7 }
 0x1d6   : > { %p1503_p13 = pnand %p1502_p0, %p1696_p12 }
 0x1d7   : > { %p1508_p8 = por %p1507_p6, %p1506_p4 }
 0x1d8   : > { %p1504_p1 = pneg %p1503_p13 }
 0x1d9   : > { %p1510_p11 = por %p1509_p10, %p1508_p8 }
 0x1db   : > { %p1511_p3 = pnand %p1510_p11, %p1504_p1 }
 0x1dd   : > { %1514 = shalt.err (!%p1511_p3)
}
 0x1de   : > { %1330 = dma.vmem_to_hbm [thread:$0]  (%p1696_p12), %s2351_s14, 128, %s2349_s7, %s1149_s25  }
 0x1df PF: > { %s1196_s26 = sand.u32 1, %s1549_s15   ;;  %p2412_p7 = scmp.ne.s32.totalorder %s2402_s22, 0 }
 0x1e0   : > { %p2413_p9 = scmp.ge.s32.totalorder %s1561_s18, 2  ;;  %s1197_s9 = scalar_lea.sflag [#allocation4], %s1196_s26 }
 0x1e2   : > { %p1343_p2 = pnand %p2413_p9, %p2412_p7 }
 0x1e4   : > { %1540 = dma.done.wait (!%p1343_p2), %s1197_s9, 128  }
 0x1e5   : > { %1542 = vsyncadd (!%p1343_p2), %s1197_s9, 4294967168  ;;  %s1206_s10 = scalar_lea.sflag [#allocation9], %s1196_s26 }
 0x1e6   : > { %1544 = dma.done.wait (!%p1343_p2), %s1206_s10, 512  }
 0x1e7   : > { %1546 = vsyncadd (!%p1343_p2), %s1206_s10, 4294966784  ;;  %p22_p12 = scmp.ge.s32.totalorder %s1661_s27, 4   ;;  %s2414_s15 = smov %s1553_s16 }
 0x1e8   : > { %s2415_s16 = smov %s1557_s17  ;;  %s2416_s17 = smov %s1692_s24 }
 0x1e9   : > { %s2417_s18 = smov %s1661_s27  ;;  %24 = sbr.rel (!%p22_p12) target bundleno = 8 (0x8), region = 104 }
 0x1f0   :  { %1211 = vsyncpa [#allocation3], 1 }
 0x1f1   :  { %1213 = vsyncpa [#allocation3 + $0x1], 1 }
 0x1f2   :  { %1214 = vsyncpa [#allocation6], 1 }
 0x1f3   :  { %1215 = vsyncpa [#allocation4], 1 }
 0x1f4   :  { %1217 = vsyncpa [#allocation4 + $0x1], 1 }
 0x1f5   :  { %1218 = vsyncpa [#allocation9], 1 }
 0x1f6   :  { %1220 = vsyncpa [#allocation9 + $0x1], 1 }

</bundles_post_ra>
